<compile_context>
chip_gen: v7x
topology: tpu7x:2x2x1
jax: 0.10.0
libtpu: 0.0.40
codegen_flags: <defaults>
</compile_context>

<pallas_src>
import functools

import jax
import jax.numpy as jnp
from jax import lax
from jax.experimental import pallas as pl
from jax.experimental.pallas import tpu as pltpu


def _round_up(x, m):
    return ((x + m - 1) // m) * m


def _divisors(n, multiple):
    """Divisors of n that are multiples of `multiple` (ascending)."""
    return [d for d in range(multiple, n + 1, multiple) if n % d == 0] or [n]


def _largest_divisor(n, multiple, cap):
    for d in range(min(n, cap), 0, -1):
        if n % d == 0 and d % multiple == 0:
            return d
    return n


def _vmem_limit_bytes():
    """Generation-aware scoped-VMEM limit (v5e/v6e 128 MiB phys, v7x 64 MiB)."""
    try:
        cap = int(getattr(pltpu.get_tpu_info(), "vmem_capacity_bytes", 64 * 2**20))
    except Exception:
        cap = 64 * 2**20          # conservative fallback (v7x physical)
    return int(max(32 * 2**20, min(cap - 8 * 2**20, 100 * 2**20)))


def _pick_proj_tiles(B_pad, T_pad, Hp, V, *, w_bytes, hs_bytes, out_bytes, budget):
    """Largest (batch_tile, time_tile) whose double-buffered blocks fit `budget`."""
    w_resident = 2 * (Hp * V * w_bytes + V * 4)          # weight + bias, 2 buffers
    best_bt, best_tt, best_rows = 8, min(T_pad, 8), 0
    for bt in _divisors(B_pad, 8):
        for tt in _divisors(T_pad, 8):
            rows = bt * tt                                # MXU M dimension
            if rows > 4096:
                continue
            blk = 2 * rows * (Hp * hs_bytes + V * out_bytes)
            if w_resident + blk > budget:
                continue
            if rows > best_rows:
                best_bt, best_tt, best_rows = bt, tt, rows
    return best_bt, best_tt


# ---------------------------------------------------------------------------
# Kernel 1: LSTM recurrence (PyTorch gate order i | f | g | o).
# Grid = (batch tiles "parallel", time chunks "arbitrary").
# ---------------------------------------------------------------------------
def _lstm_kernel(x_ref, wih_ref, whh_ref, b_ref, h0_ref, c0_ref,
                 hs_ref, hT_ref, cT_ref,
                 gx_ref, h_scr, c_scr, *, seq_len, padded_len):
    Tc, Bt, E = x_ref.shape
    Hp = h0_ref.shape[-1]
    t_chunk = pl.program_id(1)

    @pl.when(t_chunk == 0)
    def _():
        h_scr[...] = h0_ref[...]
        c_scr[...] = c0_ref[...]

    # Input-side gate pre-activations for the whole chunk in one MXU matmul,
    # hoisted off the sequential critical path (teacher forcing: x_t all known).
    x2d = x_ref[...].reshape(Tc * Bt, E)
    gx = jnp.dot(x2d, wih_ref[...], preferred_element_type=jnp.float32) + b_ref[...]
    gx_ref[...] = gx.reshape(Tc, Bt, 4 * Hp)

    t0 = t_chunk * Tc

    def step(t, carry):
        h, c = carry
        # TODO(synk): keeping W_hh resident in the MXU across steps
        # (pltpu.matmul_push_rhs / matmul_acc_lhs / matmul_pop) not adopted;
        # the low-level MXU-driving API is too version-sensitive to risk here.
        gates = gx_ref[t] + jnp.dot(h.astype(whh_ref.dtype), whh_ref[...],
                                    preferred_element_type=jnp.float32)   # (Bt, 4Hp)
        i_g = jax.nn.sigmoid(gates[:, 0 * Hp:1 * Hp])
        f_g = jax.nn.sigmoid(gates[:, 1 * Hp:2 * Hp])
        g_g = jnp.tanh(gates[:, 2 * Hp:3 * Hp])
        o_g = jax.nn.sigmoid(gates[:, 3 * Hp:4 * Hp])
        c_new = f_g * c + i_g * g_g
        h_new = o_g * jnp.tanh(c_new)
        if seq_len < padded_len:          # static: mask padded trailing steps
            valid = (t0 + t) < seq_len
            h_new = jnp.where(valid, h_new, h)
            c_new = jnp.where(valid, c_new, c)
        hs_ref[t] = h_new
        return (h_new, c_new)

    h_fin, c_fin = lax.fori_loop(0, Tc, step, (h_scr[...], c_scr[...]),
                                 unroll=True if Tc <= 32 else 8)
    h_scr[...] = h_fin
    c_scr[...] = c_fin

    @pl.when(t_chunk == pl.num_programs(1) - 1)
    def _():
        hT_ref[...] = h_fin
        cT_ref[...] = c_fin


# ---------------------------------------------------------------------------
# Kernel 2: output projection + log_softmax, tiled over (batch, time).
# ---------------------------------------------------------------------------
def _proj_kernel(hs_ref, wp_ref, bp_ref, out_ref):
    Bt, Tt, Hp = hs_ref.shape
    V = wp_ref.shape[-1]
    h2d = hs_ref[...].reshape(Bt * Tt, Hp).astype(wp_ref.dtype)
    logits = jnp.dot(h2d, wp_ref[...], preferred_element_type=jnp.float32) + bp_ref[...]
    m = jnp.max(logits, axis=-1, keepdims=True)
    z = logits - m
    lse = jnp.log(jnp.sum(jnp.exp(z), axis=-1, keepdims=True))
    out_ref[...] = (z - lse).reshape(Bt, Tt, V).astype(out_ref.dtype)


def decoder_rnn_forward(params, token_ids, init_h, init_c, max_length, *,
                        matmul_dtype=jnp.float32, out_dtype=jnp.float32):
    """Teacher-forcing forward of DecoderRNN (1-layer LSTM, no attention).

    matmul_dtype: dtype fed to the MXU (f32 for strict parity, bf16 for ~2x MXU
      throughput and half the weight/activation DMA bytes; accumulation is f32).
    out_dtype: dtype of the (B, T, V) log-prob output (bf16 halves the dominant
      HBM write, relevant on v5e/v6e).
    """
    B, T = token_ids.shape
    E = params["embedding"].shape[1]
    H = init_h.shape[-1]
    V = params["w_proj"].shape[-1]

    B_pad = _round_up(B, 8)
    T_pad = _round_up(T, 8)
    Hp = _round_up(H, 128)            # lane-aligned gate slices / hidden dim
    vmem_limit = _vmem_limit_bytes()

    # ---- parameter / state padding (zero padding -> numerics unchanged) ----
    w_ih, w_hh, bias, w_proj = (params["w_ih"], params["w_hh"],
                                params["bias"], params["w_proj"])
    if Hp != H:
        w_ih = jnp.pad(w_ih.reshape(E, 4, H),
                       ((0, 0), (0, 0), (0, Hp - H))).reshape(E, 4 * Hp)
        w_hh = jnp.pad(w_hh.reshape(H, 4, H),
                       ((0, Hp - H), (0, 0), (0, Hp - H))).reshape(Hp, 4 * Hp)
        bias = jnp.pad(bias.reshape(1, 4, H),
                       ((0, 0), (0, 0), (0, Hp - H))).reshape(1, 4 * Hp)
        w_proj = jnp.pad(w_proj, ((0, Hp - H), (0, 0)))
    b_proj = params["b_proj"]

    ids = jnp.pad(token_ids.astype(jnp.int32), ((0, B_pad - B), (0, T_pad - T)))
    h0 = jnp.pad(init_h[0], ((0, B_pad - B), (0, Hp - H)))
    c0 = jnp.pad(init_c[0], ((0, B_pad - B), (0, Hp - H)))

    # Embedding gather in the wrapper (time-major for the recurrence kernel).
    # TODO(synk): fuse the gather into kernel 1 (scalar-prefetched ids + manual
    # DMA gather) to save one HBM round trip of the (T, B, E) activation.
    ids_tm = ids.T                                           # (T_pad, B_pad)
    x_tm = params["embedding"][ids_tm].astype(matmul_dtype)  # (T_pad, B_pad, E)
    # nn.Dropout(p=0) is the identity -> nothing to do.

    w_ih = w_ih.astype(matmul_dtype)
    w_hh = w_hh.astype(matmul_dtype)
    w_proj_mm = w_proj.astype(matmul_dtype)

    # ---- kernel 1: LSTM recurrence, grid = (batch tiles, time chunks) ----
    Bt = _largest_divisor(B_pad, 8, max(8, B_pad // 2))   # >=2 tiles when possible (v7x)
    Tc = _largest_divisor(T_pad, 8, 128)                  # bounds VMEM to O(Tc*Bt)
    grid1 = (B_pad // Bt, T_pad // Tc)

    lstm = functools.partial(_lstm_kernel, seq_len=T, padded_len=T_pad)
    hs_tm, hT, cT = pl.pallas_call(
        lstm,
        out_shape=(jax.ShapeDtypeStruct((T_pad, B_pad, Hp), jnp.float32),
                   jax.ShapeDtypeStruct((B_pad, Hp), jnp.float32),
                   jax.ShapeDtypeStruct((B_pad, Hp), jnp.float32)),
        grid=grid1,
        in_specs=[pl.BlockSpec((Tc, Bt, E), lambda b, t: (t, b, 0)),
                  pl.BlockSpec((E, 4 * Hp), lambda b, t: (0, 0)),
                  pl.BlockSpec((Hp, 4 * Hp), lambda b, t: (0, 0)),
                  pl.BlockSpec((1, 4 * Hp), lambda b, t: (0, 0)),
                  pl.BlockSpec((Bt, Hp), lambda b, t: (b, 0)),
                  pl.BlockSpec((Bt, Hp), lambda b, t: (b, 0))],
        out_specs=(pl.BlockSpec((Tc, Bt, Hp), lambda b, t: (t, b, 0)),
                   pl.BlockSpec((Bt, Hp), lambda b, t: (b, 0)),
                   pl.BlockSpec((Bt, Hp), lambda b, t: (b, 0))),
        scratch_shapes=[pltpu.VMEM((Tc, Bt, 4 * Hp), jnp.float32),
                        pltpu.VMEM((Bt, Hp), jnp.float32),
                        pltpu.VMEM((Bt, Hp), jnp.float32)],
        compiler_params=pltpu.CompilerParams(
            dimension_semantics=("parallel", "arbitrary"),
            vmem_limit_bytes=vmem_limit),
    )(x_tm, w_ih, w_hh, bias, h0, c0)

    # Cheap layout change on the SMALL (T, B, H) tensor so the big (B, T, V)
    # output is written batch-first directly by kernel 2.
    hs_bt = jnp.transpose(hs_tm, (1, 0, 2))                 # (B_pad, T_pad, Hp)

    # ---- kernel 2: projection + log_softmax, grid = (batch tiles, time tiles) ----
    bt2, tt = _pick_proj_tiles(
        B_pad, T_pad, Hp, V,
        w_bytes=jnp.dtype(matmul_dtype).itemsize,
        hs_bytes=4, out_bytes=jnp.dtype(out_dtype).itemsize,
        budget=int(vmem_limit * 0.7))
    grid2 = (B_pad // bt2, T_pad // tt)
    # TODO(synk): very large vocabularies need a V-tiled (online/two-pass)
    # log_softmax; here the full-V weight / logit blocks are assumed to fit VMEM.
    out_full = pl.pallas_call(
        _proj_kernel,
        out_shape=jax.ShapeDtypeStruct((B_pad, T_pad, V), out_dtype),
        grid=grid2,
        in_specs=[pl.BlockSpec((bt2, tt, Hp), lambda b, t: (b, t, 0)),
                  pl.BlockSpec((Hp, V), lambda b, t: (0, 0)),
                  pl.BlockSpec((1, V), lambda b, t: (0, 0))],
        out_specs=pl.BlockSpec((bt2, tt, V), lambda b, t: (b, t, 0)),
        compiler_params=pltpu.CompilerParams(
            dimension_semantics=("parallel", "parallel"),
            vmem_limit_bytes=vmem_limit),
    )(hs_bt, w_proj_mm, b_proj)

    decoder_outputs = out_full[:B, :T]                      # (B, T, V) log-probs
    decoder_hidden = (hT[:B, :H][None], cT[:B, :H][None])   # each (1, B, H)
    # TODO(synk): GEN-mode autoregressive / beam-search decode loop (and the
    # per-step topk 'sequence' / EOS-shortened 'length' bookkeeping of decode())
    # is host-side python control flow in the original module; not kernelized.
    ret_dict = {"sequence": [], "length": [max_length] * B}
    return decoder_outputs, decoder_hidden, ret_dict


def decoder_rnn_reference(params, token_ids, init_h, init_c):
    """Pure-JAX reference of the same forward pass, for verification."""
    emb = params["embedding"][token_ids]                    # (B, T, E)
    H = init_h.shape[-1]

    def cell(carry, x_t):
        h, c = carry
        gates = x_t @ params["w_ih"] + h @ params["w_hh"] + params["bias"][0]
        i = jax.nn.sigmoid(gates[:, :H])
        f = jax.nn.sigmoid(gates[:, H:2 * H])
        g = jnp.tanh(gates[:, 2 * H:3 * H])
        o = jax.nn.sigmoid(gates[:, 3 * H:])
        c = f * c + i * g
        h = o * jnp.tanh(c)
        return (h, c), h

    (hT, cT), hs = lax.scan(cell, (init_h[0], init_c[0]),
                            jnp.transpose(emb, (1, 0, 2)))
    hs = jnp.transpose(hs, (1, 0, 2))                       # (B, T, H)
    logits = hs @ params["w_proj"] + params["b_proj"][0]
    return jax.nn.log_softmax(logits, axis=-1), hT, cT


def init_params(key, vocab_size, input_size, hidden_size, output_size):
    ks = jax.random.split(key, 7)
    s = 1.0 / float(hidden_size) ** 0.5
    emb = jax.random.normal(ks[0], (vocab_size, input_size), jnp.float32) * 0.1
    w_ih = jax.random.uniform(ks[1], (input_size, 4 * hidden_size), jnp.float32, -s, s)
    w_hh = jax.random.uniform(ks[2], (hidden_size, 4 * hidden_size), jnp.float32, -s, s)
    b_ih = jax.random.uniform(ks[3], (4 * hidden_size,), jnp.float32, -s, s)
    b_hh = jax.random.uniform(ks[4], (4 * hidden_size,), jnp.float32, -s, s)
    # BaseRNN.__init__ sets the LSTM forget-gate bias slice [H:2H] of every bias to 1.0
    b_ih = b_ih.at[hidden_size:2 * hidden_size].set(1.0)
    b_hh = b_hh.at[hidden_size:2 * hidden_size].set(1.0)
    bias = (b_ih + b_hh)[None, :]                           # (1, 4H)
    w_proj = jax.random.uniform(ks[5], (hidden_size, output_size), jnp.float32, -s, s)
    b_proj = jax.random.uniform(ks[6], (1, output_size), jnp.float32, -s, s)
    return dict(embedding=emb, w_ih=w_ih, w_hh=w_hh, bias=bias,
                w_proj=w_proj, b_proj=b_proj)


if __name__ == "__main__":
    B, T = 4, 8              # batch, decoded sequence length (teacher forcing)
    vocab_size = 128         # output_size defaults to vocab_size
    input_size = 32          # embedding dim
    hidden_size = 32
    max_len = T + 1

    key = jax.random.PRNGKey(0)
    kp, ki, kh, kc = jax.random.split(key, 4)
    params = init_params(kp, vocab_size, input_size, hidden_size, vocab_size)
    token_ids = jax.random.randint(ki, (B, T), 0, vocab_size, dtype=jnp.int32)
    init_h = jax.random.normal(kh, (1, B, hidden_size), jnp.float32)  # (n_layers, B, H)
    init_c = jax.random.normal(kc, (1, B, hidden_size), jnp.float32)

    ref_out, ref_h, ref_c = decoder_rnn_reference(params, token_ids, init_h, init_c)

    # Strict-parity path: f32 matmuls / f32 log-prob output.
    outs, (hT, cT), ret = decoder_rnn_forward(params, token_ids, init_h, init_c, max_len)
    jax.block_until_ready((outs, hT, cT))
    assert outs.shape == (B, T, vocab_size)
    assert jnp.allclose(outs, ref_out, atol=1e-3, rtol=1e-3)
    assert jnp.allclose(hT[0], ref_h, atol=1e-3, rtol=1e-3)
    assert jnp.allclose(cT[0], ref_c, atol=1e-3, rtol=1e-3)

    # Perf path: bf16 MXU matmuls (f32 accumulate) + bf16 log-prob output.
    outs_bf, (hT_bf, cT_bf), _ = decoder_rnn_forward(
        params, token_ids, init_h, init_c, max_len,
        matmul_dtype=jnp.bfloat16, out_dtype=jnp.bfloat16)
    jax.block_until_ready((outs_bf, hT_bf, cT_bf))
    assert jnp.allclose(outs_bf.astype(jnp.float32), ref_out, atol=6e-2, rtol=6e-2)
    assert jnp.allclose(hT_bf[0], ref_h, atol=6e-2, rtol=6e-2)
    assert jnp.allclose(cT_bf[0], ref_c, atol=6e-2, rtol=6e-2)

    print("KERNEL_OK")
</pallas_src>

<mosaic_0001>
module attributes {stable_mosaic.version = 11 : i64} {
  func.func @_lstm_kernel(%arg0: i32, %arg1: i32, %arg2: memref<8x8x32xf32, #tpu.memory_space<vmem>>, %arg3: memref<32x512xf32, #tpu.memory_space<vmem>>, %arg4: memref<128x512xf32, #tpu.memory_space<vmem>>, %arg5: memref<1x512xf32, #tpu.memory_space<vmem>>, %arg6: memref<8x128xf32, #tpu.memory_space<vmem>>, %arg7: memref<8x128xf32, #tpu.memory_space<vmem>>, %arg8: memref<8x8x128xf32, #tpu.memory_space<vmem>>, %arg9: memref<8x128xf32, #tpu.memory_space<vmem>>, %arg10: memref<8x128xf32, #tpu.memory_space<vmem>>, %arg11: memref<8x8x512xf32, #tpu.memory_space<vmem>>, %arg12: memref<8x128xf32, #tpu.memory_space<vmem>>, %arg13: memref<8x128xf32, #tpu.memory_space<vmem>>) attributes {dimension_semantics = [#tpu.dimension_semantics<parallel>, #tpu.dimension_semantics<arbitrary>], iteration_bounds = array<i64: 1, 1>, scalar_prefetch = 0 : i64, scratch_operands = 3 : i64, tpu.core_type = #tpu.core_type<tc>, window_params = [{transform_indices = @transform_0, window_bounds = array<i64: 8, 8, 32>}, {pipeline_mode = #tpu.pipeline_mode<synchronous>, transform_indices = @transform_1, window_bounds = array<i64: 32, 512>}, {pipeline_mode = #tpu.pipeline_mode<synchronous>, transform_indices = @transform_2, window_bounds = array<i64: 128, 512>}, {pipeline_mode = #tpu.pipeline_mode<synchronous>, transform_indices = @transform_3, window_bounds = array<i64: 1, 512>}, {transform_indices = @transform_4, window_bounds = array<i64: 8, 128>}, {transform_indices = @transform_5, window_bounds = array<i64: 8, 128>}, {transform_indices = @transform_6, window_bounds = array<i64: 8, 8, 128>}, {transform_indices = @transform_7, window_bounds = array<i64: 8, 128>}, {transform_indices = @transform_8, window_bounds = array<i64: 8, 128>}]} {
    %c0_i32 = arith.constant 0 : i32
    %0 = arith.cmpi eq, %arg1, %c0_i32 : i32
    %1 = arith.extui %0 : i1 to i32
    %c0_i32_0 = arith.constant 0 : i32
    %2 = arith.cmpi ne, %1, %c0_i32_0 : i32
    scf.if %2 {
      %c0_101 = arith.constant 0 : index
      %c0_102 = arith.constant 0 : index
      %299 = vector.load %arg6[%c0_101, %c0_102] : memref<8x128xf32, #tpu.memory_space<vmem>>, vector<8x128xf32>
      %c0_103 = arith.constant 0 : index
      %c0_104 = arith.constant 0 : index
      %300 = vector.load %arg12[%c0_103, %c0_104] : memref<8x128xf32, #tpu.memory_space<vmem>>, vector<8x128xf32>
      tpu.vector_store %arg12[%c0_103, %c0_104], %299 {strides = array<i32>} : memref<8x128xf32, #tpu.memory_space<vmem>>, vector<8x128xf32>,
      %c0_105 = arith.constant 0 : index
      %c0_106 = arith.constant 0 : index
      %301 = vector.load %arg7[%c0_105, %c0_106] : memref<8x128xf32, #tpu.memory_space<vmem>>, vector<8x128xf32>
      %c0_107 = arith.constant 0 : index
      %c0_108 = arith.constant 0 : index
      %302 = vector.load %arg13[%c0_107, %c0_108] : memref<8x128xf32, #tpu.memory_space<vmem>>, vector<8x128xf32>
      tpu.vector_store %arg13[%c0_107, %c0_108], %301 {strides = array<i32>} : memref<8x128xf32, #tpu.memory_space<vmem>>, vector<8x128xf32>,
    } else {
    }
    %c0 = arith.constant 0 : index
    %c0_1 = arith.constant 0 : index
    %c0_2 = arith.constant 0 : index
    %3 = vector.load %arg2[%c0, %c0_1, %c0_2] : memref<8x8x32xf32, #tpu.memory_space<vmem>>, vector<8x8x32xf32>
    %4 = vector.shape_cast %3 : vector<8x8x32xf32> to vector<64x32xf32>
    %c0_3 = arith.constant 0 : index
    %c0_4 = arith.constant 0 : index
    %5 = vector.load %arg3[%c0_3, %c0_4] : memref<32x512xf32, #tpu.memory_space<vmem>>, vector<32x512xf32>
    %cst = arith.constant dense<0.000000e+00> : vector<64x512xf32>
    %6 = tpu.matmul %4, %5, %cst {dimension_numbers = #tpu.dot_dimension_numbers<[1], [0], [0], [1], [0, 0, 1, 1], [], []>} : vector<64x32xf32>, vector<32x512xf32>, vector<64x512xf32> -> vector<64x512xf32>
    %c0_5 = arith.constant 0 : index
    %c0_6 = arith.constant 0 : index
    %7 = vector.load %arg5[%c0_5, %c0_6] : memref<1x512xf32, #tpu.memory_space<vmem>>, vector<1x512xf32>
    %8 = vector.broadcast %7 : vector<1x512xf32> to vector<64x512xf32>
    %9 = arith.addf %6, %8 : vector<64x512xf32>
    %10 = vector.shape_cast %9 : vector<64x512xf32> to vector<8x8x512xf32>
    %c0_7 = arith.constant 0 : index
    %c0_8 = arith.constant 0 : index
    %c0_9 = arith.constant 0 : index
    %11 = vector.load %arg11[%c0_7, %c0_8, %c0_9] : memref<8x8x512xf32, #tpu.memory_space<vmem>>, vector<8x8x512xf32>
    tpu.vector_store %arg11[%c0_7, %c0_8, %c0_9], %10 {strides = array<i32>} : memref<8x8x512xf32, #tpu.memory_space<vmem>>, vector<8x8x512xf32>,
    %c0_10 = arith.constant 0 : index
    %c0_11 = arith.constant 0 : index
    %12 = vector.load %arg12[%c0_10, %c0_11] : memref<8x128xf32, #tpu.memory_space<vmem>>, vector<8x128xf32>
    %c0_12 = arith.constant 0 : index
    %c0_13 = arith.constant 0 : index
    %13 = vector.load %arg13[%c0_12, %c0_13] : memref<8x128xf32, #tpu.memory_space<vmem>>, vector<8x128xf32>
    %c0_i32_14 = arith.constant 0 : i32
    %14 = arith.index_cast %c0_i32_14 : i32 to index
    %c0_15 = arith.constant 0 : index
    %c0_16 = arith.constant 0 : index
    %15 = vector.load %arg11[%14, %c0_15, %c0_16] : memref<8x8x512xf32, #tpu.memory_space<vmem>>, vector<1x8x512xf32>
    %16 = vector.shape_cast %15 : vector<1x8x512xf32> to vector<8x512xf32>
    %c0_17 = arith.constant 0 : index
    %c0_18 = arith.constant 0 : index
    %17 = vector.load %arg4[%c0_17, %c0_18] : memref<128x512xf32, #tpu.memory_space<vmem>>, vector<128x512xf32>
    %cst_19 = arith.constant dense<0.000000e+00> : vector<8x512xf32>
    %18 = tpu.matmul %12, %17, %cst_19 {dimension_numbers = #tpu.dot_dimension_numbers<[1], [0], [0], [1], [0, 0, 1, 1], [], []>} : vector<8x128xf32>, vector<128x512xf32>, vector<8x512xf32> -> vector<8x512xf32>
    %19 = arith.addf %16, %18 : vector<8x512xf32>
    %20 = vector.extract_strided_slice %19 {offsets = [0, 0], sizes = [8, 128], strides = [1, 1]} : vector<8x512xf32> to vector<8x128xf32>
    %21 = arith.negf %20 : vector<8x128xf32>
    %22 = math.exp %21 : vector<8x128xf32>
    %cst_20 = arith.constant 1.000000e+00 : f32
    %23 = vector.broadcast %cst_20 : f32 to vector<8x128xf32>
    %24 = arith.addf %23, %22 : vector<8x128xf32>
    %25 = arith.divf %23, %24 : vector<8x128xf32>
    %26 = vector.extract_strided_slice %19 {offsets = [0, 128], sizes = [8, 128], strides = [1, 1]} : vector<8x512xf32> to vector<8x128xf32>
    %27 = arith.negf %26 : vector<8x128xf32>
    %28 = math.exp %27 : vector<8x128xf32>
    %cst_21 = arith.constant 1.000000e+00 : f32
    %29 = vector.broadcast %cst_21 : f32 to vector<8x128xf32>
    %30 = arith.addf %29, %28 : vector<8x128xf32>
    %31 = arith.divf %29, %30 : vector<8x128xf32>
    %32 = vector.extract_strided_slice %19 {offsets = [0, 256], sizes = [8, 128], strides = [1, 1]} : vector<8x512xf32> to vector<8x128xf32>
    %33 = math.tanh %32 : vector<8x128xf32>
    %34 = vector.extract_strided_slice %19 {offsets = [0, 384], sizes = [8, 128], strides = [1, 1]} : vector<8x512xf32> to vector<8x128xf32>
    %35 = arith.negf %34 : vector<8x128xf32>
    %36 = math.exp %35 : vector<8x128xf32>
    %cst_22 = arith.constant 1.000000e+00 : f32
    %37 = vector.broadcast %cst_22 : f32 to vector<8x128xf32>
    %38 = arith.addf %37, %36 : vector<8x128xf32>
    %39 = arith.divf %37, %38 : vector<8x128xf32>
    %40 = arith.mulf %31, %13 : vector<8x128xf32>
    %41 = arith.mulf %25, %33 : vector<8x128xf32>
    %42 = arith.addf %40, %41 : vector<8x128xf32>
    %43 = math.tanh %42 : vector<8x128xf32>
    %44 = arith.mulf %39, %43 : vector<8x128xf32>
    %45 = arith.index_cast %c0_i32_14 : i32 to index
    %c0_23 = arith.constant 0 : index
    %c0_24 = arith.constant 0 : index
    %46 = vector.load %arg8[%45, %c0_23, %c0_24] : memref<8x8x128xf32, #tpu.memory_space<vmem>>, vector<1x8x128xf32>
    %47 = vector.shape_cast %46 : vector<1x8x128xf32> to vector<8x128xf32>
    %48 = vector.shape_cast %44 : vector<8x128xf32> to vector<1x8x128xf32>
    tpu.vector_store %arg8[%45, %c0_23, %c0_24], %48 {strides = array<i32>} : memref<8x8x128xf32, #tpu.memory_space<vmem>>, vector<1x8x128xf32>,
    %c1_i32 = arith.constant 1 : i32
    %49 = arith.index_cast %c1_i32 : i32 to index
    %c0_25 = arith.constant 0 : index
    %c0_26 = arith.constant 0 : index
    %50 = vector.load %arg11[%49, %c0_25, %c0_26] : memref<8x8x512xf32, #tpu.memory_space<vmem>>, vector<1x8x512xf32>
    %51 = vector.shape_cast %50 : vector<1x8x512xf32> to vector<8x512xf32>
    %c0_27 = arith.constant 0 : index
    %c0_28 = arith.constant 0 : index
    %52 = vector.load %arg4[%c0_27, %c0_28] : memref<128x512xf32, #tpu.memory_space<vmem>>, vector<128x512xf32>
    %cst_29 = arith.constant dense<0.000000e+00> : vector<8x512xf32>
    %53 = tpu.matmul %44, %52, %cst_29 {dimension_numbers = #tpu.dot_dimension_numbers<[1], [0], [0], [1], [0, 0, 1, 1], [], []>} : vector<8x128xf32>, vector<128x512xf32>, vector<8x512xf32> -> vector<8x512xf32>
    %54 = arith.addf %51, %53 : vector<8x512xf32>
    %55 = vector.extract_strided_slice %54 {offsets = [0, 0], sizes = [8, 128], strides = [1, 1]} : vector<8x512xf32> to vector<8x128xf32>
    %56 = arith.negf %55 : vector<8x128xf32>
    %57 = math.exp %56 : vector<8x128xf32>
    %cst_30 = arith.constant 1.000000e+00 : f32
    %58 = vector.broadcast %cst_30 : f32 to vector<8x128xf32>
    %59 = arith.addf %58, %57 : vector<8x128xf32>
    %60 = arith.divf %58, %59 : vector<8x128xf32>
    %61 = vector.extract_strided_slice %54 {offsets = [0, 128], sizes = [8, 128], strides = [1, 1]} : vector<8x512xf32> to vector<8x128xf32>
    %62 = arith.negf %61 : vector<8x128xf32>
    %63 = math.exp %62 : vector<8x128xf32>
    %cst_31 = arith.constant 1.000000e+00 : f32
    %64 = vector.broadcast %cst_31 : f32 to vector<8x128xf32>
    %65 = arith.addf %64, %63 : vector<8x128xf32>
    %66 = arith.divf %64, %65 : vector<8x128xf32>
    %67 = vector.extract_strided_slice %54 {offsets = [0, 256], sizes = [8, 128], strides = [1, 1]} : vector<8x512xf32> to vector<8x128xf32>
    %68 = math.tanh %67 : vector<8x128xf32>
    %69 = vector.extract_strided_slice %54 {offsets = [0, 384], sizes = [8, 128], strides = [1, 1]} : vector<8x512xf32> to vector<8x128xf32>
    %70 = arith.negf %69 : vector<8x128xf32>
    %71 = math.exp %70 : vector<8x128xf32>
    %cst_32 = arith.constant 1.000000e+00 : f32
    %72 = vector.broadcast %cst_32 : f32 to vector<8x128xf32>
    %73 = arith.addf %72, %71 : vector<8x128xf32>
    %74 = arith.divf %72, %73 : vector<8x128xf32>
    %75 = arith.mulf %66, %42 : vector<8x128xf32>
    %76 = arith.mulf %60, %68 : vector<8x128xf32>
    %77 = arith.addf %75, %76 : vector<8x128xf32>
    %78 = math.tanh %77 : vector<8x128xf32>
    %79 = arith.mulf %74, %78 : vector<8x128xf32>
    %80 = arith.index_cast %c1_i32 : i32 to index
    %c0_33 = arith.constant 0 : index
    %c0_34 = arith.constant 0 : index
    %81 = vector.load %arg8[%80, %c0_33, %c0_34] : memref<8x8x128xf32, #tpu.memory_space<vmem>>, vector<1x8x128xf32>
    %82 = vector.shape_cast %81 : vector<1x8x128xf32> to vector<8x128xf32>
    %83 = vector.shape_cast %79 : vector<8x128xf32> to vector<1x8x128xf32>
    tpu.vector_store %arg8[%80, %c0_33, %c0_34], %83 {strides = array<i32>} : memref<8x8x128xf32, #tpu.memory_space<vmem>>, vector<1x8x128xf32>,
    %c2_i32 = arith.constant 2 : i32
    %84 = arith.index_cast %c2_i32 : i32 to index
    %c0_35 = arith.constant 0 : index
    %c0_36 = arith.constant 0 : index
    %85 = vector.load %arg11[%84, %c0_35, %c0_36] : memref<8x8x512xf32, #tpu.memory_space<vmem>>, vector<1x8x512xf32>
    %86 = vector.shape_cast %85 : vector<1x8x512xf32> to vector<8x512xf32>
    %c0_37 = arith.constant 0 : index
    %c0_38 = arith.constant 0 : index
    %87 = vector.load %arg4[%c0_37, %c0_38] : memref<128x512xf32, #tpu.memory_space<vmem>>, vector<128x512xf32>
    %cst_39 = arith.constant dense<0.000000e+00> : vector<8x512xf32>
    %88 = tpu.matmul %79, %87, %cst_39 {dimension_numbers = #tpu.dot_dimension_numbers<[1], [0], [0], [1], [0, 0, 1, 1], [], []>} : vector<8x128xf32>, vector<128x512xf32>, vector<8x512xf32> -> vector<8x512xf32>
    %89 = arith.addf %86, %88 : vector<8x512xf32>
    %90 = vector.extract_strided_slice %89 {offsets = [0, 0], sizes = [8, 128], strides = [1, 1]} : vector<8x512xf32> to vector<8x128xf32>
    %91 = arith.negf %90 : vector<8x128xf32>
    %92 = math.exp %91 : vector<8x128xf32>
    %cst_40 = arith.constant 1.000000e+00 : f32
    %93 = vector.broadcast %cst_40 : f32 to vector<8x128xf32>
    %94 = arith.addf %93, %92 : vector<8x128xf32>
    %95 = arith.divf %93, %94 : vector<8x128xf32>
    %96 = vector.extract_strided_slice %89 {offsets = [0, 128], sizes = [8, 128], strides = [1, 1]} : vector<8x512xf32> to vector<8x128xf32>
    %97 = arith.negf %96 : vector<8x128xf32>
    %98 = math.exp %97 : vector<8x128xf32>
    %cst_41 = arith.constant 1.000000e+00 : f32
    %99 = vector.broadcast %cst_41 : f32 to vector<8x128xf32>
    %100 = arith.addf %99, %98 : vector<8x128xf32>
    %101 = arith.divf %99, %100 : vector<8x128xf32>
    %102 = vector.extract_strided_slice %89 {offsets = [0, 256], sizes = [8, 128], strides = [1, 1]} : vector<8x512xf32> to vector<8x128xf32>
    %103 = math.tanh %102 : vector<8x128xf32>
    %104 = vector.extract_strided_slice %89 {offsets = [0, 384], sizes = [8, 128], strides = [1, 1]} : vector<8x512xf32> to vector<8x128xf32>
    %105 = arith.negf %104 : vector<8x128xf32>
    %106 = math.exp %105 : vector<8x128xf32>
    %cst_42 = arith.constant 1.000000e+00 : f32
    %107 = vector.broadcast %cst_42 : f32 to vector<8x128xf32>
    %108 = arith.addf %107, %106 : vector<8x128xf32>
    %109 = arith.divf %107, %108 : vector<8x128xf32>
    %110 = arith.mulf %101, %77 : vector<8x128xf32>
    %111 = arith.mulf %95, %103 : vector<8x128xf32>
    %112 = arith.addf %110, %111 : vector<8x128xf32>
    %113 = math.tanh %112 : vector<8x128xf32>
    %114 = arith.mulf %109, %113 : vector<8x128xf32>
    %115 = arith.index_cast %c2_i32 : i32 to index
    %c0_43 = arith.constant 0 : index
    %c0_44 = arith.constant 0 : index
    %116 = vector.load %arg8[%115, %c0_43, %c0_44] : memref<8x8x128xf32, #tpu.memory_space<vmem>>, vector<1x8x128xf32>
    %117 = vector.shape_cast %116 : vector<1x8x128xf32> to vector<8x128xf32>
    %118 = vector.shape_cast %114 : vector<8x128xf32> to vector<1x8x128xf32>
    tpu.vector_store %arg8[%115, %c0_43, %c0_44], %118 {strides = array<i32>} : memref<8x8x128xf32, #tpu.memory_space<vmem>>, vector<1x8x128xf32>,
    %c3_i32 = arith.constant 3 : i32
    %119 = arith.index_cast %c3_i32 : i32 to index
    %c0_45 = arith.constant 0 : index
    %c0_46 = arith.constant 0 : index
    %120 = vector.load %arg11[%119, %c0_45, %c0_46] : memref<8x8x512xf32, #tpu.memory_space<vmem>>, vector<1x8x512xf32>
    %121 = vector.shape_cast %120 : vector<1x8x512xf32> to vector<8x512xf32>
    %c0_47 = arith.constant 0 : index
    %c0_48 = arith.constant 0 : index
    %122 = vector.load %arg4[%c0_47, %c0_48] : memref<128x512xf32, #tpu.memory_space<vmem>>, vector<128x512xf32>
    %cst_49 = arith.constant dense<0.000000e+00> : vector<8x512xf32>
    %123 = tpu.matmul %114, %122, %cst_49 {dimension_numbers = #tpu.dot_dimension_numbers<[1], [0], [0], [1], [0, 0, 1, 1], [], []>} : vector<8x128xf32>, vector<128x512xf32>, vector<8x512xf32> -> vector<8x512xf32>
    %124 = arith.addf %121, %123 : vector<8x512xf32>
    %125 = vector.extract_strided_slice %124 {offsets = [0, 0], sizes = [8, 128], strides = [1, 1]} : vector<8x512xf32> to vector<8x128xf32>
    %126 = arith.negf %125 : vector<8x128xf32>
    %127 = math.exp %126 : vector<8x128xf32>
    %cst_50 = arith.constant 1.000000e+00 : f32
    %128 = vector.broadcast %cst_50 : f32 to vector<8x128xf32>
    %129 = arith.addf %128, %127 : vector<8x128xf32>
    %130 = arith.divf %128, %129 : vector<8x128xf32>
    %131 = vector.extract_strided_slice %124 {offsets = [0, 128], sizes = [8, 128], strides = [1, 1]} : vector<8x512xf32> to vector<8x128xf32>
    %132 = arith.negf %131 : vector<8x128xf32>
    %133 = math.exp %132 : vector<8x128xf32>
    %cst_51 = arith.constant 1.000000e+00 : f32
    %134 = vector.broadcast %cst_51 : f32 to vector<8x128xf32>
    %135 = arith.addf %134, %133 : vector<8x128xf32>
    %136 = arith.divf %134, %135 : vector<8x128xf32>
    %137 = vector.extract_strided_slice %124 {offsets = [0, 256], sizes = [8, 128], strides = [1, 1]} : vector<8x512xf32> to vector<8x128xf32>
    %138 = math.tanh %137 : vector<8x128xf32>
    %139 = vector.extract_strided_slice %124 {offsets = [0, 384], sizes = [8, 128], strides = [1, 1]} : vector<8x512xf32> to vector<8x128xf32>
    %140 = arith.negf %139 : vector<8x128xf32>
    %141 = math.exp %140 : vector<8x128xf32>
    %cst_52 = arith.constant 1.000000e+00 : f32
    %142 = vector.broadcast %cst_52 : f32 to vector<8x128xf32>
    %143 = arith.addf %142, %141 : vector<8x128xf32>
    %144 = arith.divf %142, %143 : vector<8x128xf32>
    %145 = arith.mulf %136, %112 : vector<8x128xf32>
    %146 = arith.mulf %130, %138 : vector<8x128xf32>
    %147 = arith.addf %145, %146 : vector<8x128xf32>
    %148 = math.tanh %147 : vector<8x128xf32>
    %149 = arith.mulf %144, %148 : vector<8x128xf32>
    %150 = arith.index_cast %c3_i32 : i32 to index
    %c0_53 = arith.constant 0 : index
    %c0_54 = arith.constant 0 : index
    %151 = vector.load %arg8[%150, %c0_53, %c0_54] : memref<8x8x128xf32, #tpu.memory_space<vmem>>, vector<1x8x128xf32>
    %152 = vector.shape_cast %151 : vector<1x8x128xf32> to vector<8x128xf32>
    %153 = vector.shape_cast %149 : vector<8x128xf32> to vector<1x8x128xf32>
    tpu.vector_store %arg8[%150, %c0_53, %c0_54], %153 {strides = array<i32>} : memref<8x8x128xf32, #tpu.memory_space<vmem>>, vector<1x8x128xf32>,
    %c4_i32 = arith.constant 4 : i32
    %154 = arith.index_cast %c4_i32 : i32 to index
    %c0_55 = arith.constant 0 : index
    %c0_56 = arith.constant 0 : index
    %155 = vector.load %arg11[%154, %c0_55, %c0_56] : memref<8x8x512xf32, #tpu.memory_space<vmem>>, vector<1x8x512xf32>
    %156 = vector.shape_cast %155 : vector<1x8x512xf32> to vector<8x512xf32>
    %c0_57 = arith.constant 0 : index
    %c0_58 = arith.constant 0 : index
    %157 = vector.load %arg4[%c0_57, %c0_58] : memref<128x512xf32, #tpu.memory_space<vmem>>, vector<128x512xf32>
    %cst_59 = arith.constant dense<0.000000e+00> : vector<8x512xf32>
    %158 = tpu.matmul %149, %157, %cst_59 {dimension_numbers = #tpu.dot_dimension_numbers<[1], [0], [0], [1], [0, 0, 1, 1], [], []>} : vector<8x128xf32>, vector<128x512xf32>, vector<8x512xf32> -> vector<8x512xf32>
    %159 = arith.addf %156, %158 : vector<8x512xf32>
    %160 = vector.extract_strided_slice %159 {offsets = [0, 0], sizes = [8, 128], strides = [1, 1]} : vector<8x512xf32> to vector<8x128xf32>
    %161 = arith.negf %160 : vector<8x128xf32>
    %162 = math.exp %161 : vector<8x128xf32>
    %cst_60 = arith.constant 1.000000e+00 : f32
    %163 = vector.broadcast %cst_60 : f32 to vector<8x128xf32>
    %164 = arith.addf %163, %162 : vector<8x128xf32>
    %165 = arith.divf %163, %164 : vector<8x128xf32>
    %166 = vector.extract_strided_slice %159 {offsets = [0, 128], sizes = [8, 128], strides = [1, 1]} : vector<8x512xf32> to vector<8x128xf32>
    %167 = arith.negf %166 : vector<8x128xf32>
    %168 = math.exp %167 : vector<8x128xf32>
    %cst_61 = arith.constant 1.000000e+00 : f32
    %169 = vector.broadcast %cst_61 : f32 to vector<8x128xf32>
    %170 = arith.addf %169, %168 : vector<8x128xf32>
    %171 = arith.divf %169, %170 : vector<8x128xf32>
    %172 = vector.extract_strided_slice %159 {offsets = [0, 256], sizes = [8, 128], strides = [1, 1]} : vector<8x512xf32> to vector<8x128xf32>
    %173 = math.tanh %172 : vector<8x128xf32>
    %174 = vector.extract_strided_slice %159 {offsets = [0, 384], sizes = [8, 128], strides = [1, 1]} : vector<8x512xf32> to vector<8x128xf32>
    %175 = arith.negf %174 : vector<8x128xf32>
    %176 = math.exp %175 : vector<8x128xf32>
    %cst_62 = arith.constant 1.000000e+00 : f32
    %177 = vector.broadcast %cst_62 : f32 to vector<8x128xf32>
    %178 = arith.addf %177, %176 : vector<8x128xf32>
    %179 = arith.divf %177, %178 : vector<8x128xf32>
    %180 = arith.mulf %171, %147 : vector<8x128xf32>
    %181 = arith.mulf %165, %173 : vector<8x128xf32>
    %182 = arith.addf %180, %181 : vector<8x128xf32>
    %183 = math.tanh %182 : vector<8x128xf32>
    %184 = arith.mulf %179, %183 : vector<8x128xf32>
    %185 = arith.index_cast %c4_i32 : i32 to index
    %c0_63 = arith.constant 0 : index
    %c0_64 = arith.constant 0 : index
    %186 = vector.load %arg8[%185, %c0_63, %c0_64] : memref<8x8x128xf32, #tpu.memory_space<vmem>>, vector<1x8x128xf32>
    %187 = vector.shape_cast %186 : vector<1x8x128xf32> to vector<8x128xf32>
    %188 = vector.shape_cast %184 : vector<8x128xf32> to vector<1x8x128xf32>
    tpu.vector_store %arg8[%185, %c0_63, %c0_64], %188 {strides = array<i32>} : memref<8x8x128xf32, #tpu.memory_space<vmem>>, vector<1x8x128xf32>,
    %c5_i32 = arith.constant 5 : i32
    %189 = arith.index_cast %c5_i32 : i32 to index
    %c0_65 = arith.constant 0 : index
    %c0_66 = arith.constant 0 : index
    %190 = vector.load %arg11[%189, %c0_65, %c0_66] : memref<8x8x512xf32, #tpu.memory_space<vmem>>, vector<1x8x512xf32>
    %191 = vector.shape_cast %190 : vector<1x8x512xf32> to vector<8x512xf32>
    %c0_67 = arith.constant 0 : index
    %c0_68 = arith.constant 0 : index
    %192 = vector.load %arg4[%c0_67, %c0_68] : memref<128x512xf32, #tpu.memory_space<vmem>>, vector<128x512xf32>
    %cst_69 = arith.constant dense<0.000000e+00> : vector<8x512xf32>
    %193 = tpu.matmul %184, %192, %cst_69 {dimension_numbers = #tpu.dot_dimension_numbers<[1], [0], [0], [1], [0, 0, 1, 1], [], []>} : vector<8x128xf32>, vector<128x512xf32>, vector<8x512xf32> -> vector<8x512xf32>
    %194 = arith.addf %191, %193 : vector<8x512xf32>
    %195 = vector.extract_strided_slice %194 {offsets = [0, 0], sizes = [8, 128], strides = [1, 1]} : vector<8x512xf32> to vector<8x128xf32>
    %196 = arith.negf %195 : vector<8x128xf32>
    %197 = math.exp %196 : vector<8x128xf32>
    %cst_70 = arith.constant 1.000000e+00 : f32
    %198 = vector.broadcast %cst_70 : f32 to vector<8x128xf32>
    %199 = arith.addf %198, %197 : vector<8x128xf32>
    %200 = arith.divf %198, %199 : vector<8x128xf32>
    %201 = vector.extract_strided_slice %194 {offsets = [0, 128], sizes = [8, 128], strides = [1, 1]} : vector<8x512xf32> to vector<8x128xf32>
    %202 = arith.negf %201 : vector<8x128xf32>
    %203 = math.exp %202 : vector<8x128xf32>
    %cst_71 = arith.constant 1.000000e+00 : f32
    %204 = vector.broadcast %cst_71 : f32 to vector<8x128xf32>
    %205 = arith.addf %204, %203 : vector<8x128xf32>
    %206 = arith.divf %204, %205 : vector<8x128xf32>
    %207 = vector.extract_strided_slice %194 {offsets = [0, 256], sizes = [8, 128], strides = [1, 1]} : vector<8x512xf32> to vector<8x128xf32>
    %208 = math.tanh %207 : vector<8x128xf32>
    %209 = vector.extract_strided_slice %194 {offsets = [0, 384], sizes = [8, 128], strides = [1, 1]} : vector<8x512xf32> to vector<8x128xf32>
    %210 = arith.negf %209 : vector<8x128xf32>
    %211 = math.exp %210 : vector<8x128xf32>
    %cst_72 = arith.constant 1.000000e+00 : f32
    %212 = vector.broadcast %cst_72 : f32 to vector<8x128xf32>
    %213 = arith.addf %212, %211 : vector<8x128xf32>
    %214 = arith.divf %212, %213 : vector<8x128xf32>
    %215 = arith.mulf %206, %182 : vector<8x128xf32>
    %216 = arith.mulf %200, %208 : vector<8x128xf32>
    %217 = arith.addf %215, %216 : vector<8x128xf32>
    %218 = math.tanh %217 : vector<8x128xf32>
    %219 = arith.mulf %214, %218 : vector<8x128xf32>
    %220 = arith.index_cast %c5_i32 : i32 to index
    %c0_73 = arith.constant 0 : index
    %c0_74 = arith.constant 0 : index
    %221 = vector.load %arg8[%220, %c0_73, %c0_74] : memref<8x8x128xf32, #tpu.memory_space<vmem>>, vector<1x8x128xf32>
    %222 = vector.shape_cast %221 : vector<1x8x128xf32> to vector<8x128xf32>
    %223 = vector.shape_cast %219 : vector<8x128xf32> to vector<1x8x128xf32>
    tpu.vector_store %arg8[%220, %c0_73, %c0_74], %223 {strides = array<i32>} : memref<8x8x128xf32, #tpu.memory_space<vmem>>, vector<1x8x128xf32>,
    %c6_i32 = arith.constant 6 : i32
    %224 = arith.index_cast %c6_i32 : i32 to index
    %c0_75 = arith.constant 0 : index
    %c0_76 = arith.constant 0 : index
    %225 = vector.load %arg11[%224, %c0_75, %c0_76] : memref<8x8x512xf32, #tpu.memory_space<vmem>>, vector<1x8x512xf32>
    %226 = vector.shape_cast %225 : vector<1x8x512xf32> to vector<8x512xf32>
    %c0_77 = arith.constant 0 : index
    %c0_78 = arith.constant 0 : index
    %227 = vector.load %arg4[%c0_77, %c0_78] : memref<128x512xf32, #tpu.memory_space<vmem>>, vector<128x512xf32>
    %cst_79 = arith.constant dense<0.000000e+00> : vector<8x512xf32>
    %228 = tpu.matmul %219, %227, %cst_79 {dimension_numbers = #tpu.dot_dimension_numbers<[1], [0], [0], [1], [0, 0, 1, 1], [], []>} : vector<8x128xf32>, vector<128x512xf32>, vector<8x512xf32> -> vector<8x512xf32>
    %229 = arith.addf %226, %228 : vector<8x512xf32>
    %230 = vector.extract_strided_slice %229 {offsets = [0, 0], sizes = [8, 128], strides = [1, 1]} : vector<8x512xf32> to vector<8x128xf32>
    %231 = arith.negf %230 : vector<8x128xf32>
    %232 = math.exp %231 : vector<8x128xf32>
    %cst_80 = arith.constant 1.000000e+00 : f32
    %233 = vector.broadcast %cst_80 : f32 to vector<8x128xf32>
    %234 = arith.addf %233, %232 : vector<8x128xf32>
    %235 = arith.divf %233, %234 : vector<8x128xf32>
    %236 = vector.extract_strided_slice %229 {offsets = [0, 128], sizes = [8, 128], strides = [1, 1]} : vector<8x512xf32> to vector<8x128xf32>
    %237 = arith.negf %236 : vector<8x128xf32>
    %238 = math.exp %237 : vector<8x128xf32>
    %cst_81 = arith.constant 1.000000e+00 : f32
    %239 = vector.broadcast %cst_81 : f32 to vector<8x128xf32>
    %240 = arith.addf %239, %238 : vector<8x128xf32>
    %241 = arith.divf %239, %240 : vector<8x128xf32>
    %242 = vector.extract_strided_slice %229 {offsets = [0, 256], sizes = [8, 128], strides = [1, 1]} : vector<8x512xf32> to vector<8x128xf32>
    %243 = math.tanh %242 : vector<8x128xf32>
    %244 = vector.extract_strided_slice %229 {offsets = [0, 384], sizes = [8, 128], strides = [1, 1]} : vector<8x512xf32> to vector<8x128xf32>
    %245 = arith.negf %244 : vector<8x128xf32>
    %246 = math.exp %245 : vector<8x128xf32>
    %cst_82 = arith.constant 1.000000e+00 : f32
    %247 = vector.broadcast %cst_82 : f32 to vector<8x128xf32>
    %248 = arith.addf %247, %246 : vector<8x128xf32>
    %249 = arith.divf %247, %248 : vector<8x128xf32>
    %250 = arith.mulf %241, %217 : vector<8x128xf32>
    %251 = arith.mulf %235, %243 : vector<8x128xf32>
    %252 = arith.addf %250, %251 : vector<8x128xf32>
    %253 = math.tanh %252 : vector<8x128xf32>
    %254 = arith.mulf %249, %253 : vector<8x128xf32>
    %255 = arith.index_cast %c6_i32 : i32 to index
    %c0_83 = arith.constant 0 : index
    %c0_84 = arith.constant 0 : index
    %256 = vector.load %arg8[%255, %c0_83, %c0_84] : memref<8x8x128xf32, #tpu.memory_space<vmem>>, vector<1x8x128xf32>
    %257 = vector.shape_cast %256 : vector<1x8x128xf32> to vector<8x128xf32>
    %258 = vector.shape_cast %254 : vector<8x128xf32> to vector<1x8x128xf32>
    tpu.vector_store %arg8[%255, %c0_83, %c0_84], %258 {strides = array<i32>} : memref<8x8x128xf32, #tpu.memory_space<vmem>>, vector<1x8x128xf32>,
    %c7_i32 = arith.constant 7 : i32
    %259 = arith.index_cast %c7_i32 : i32 to index
    %c0_85 = arith.constant 0 : index
    %c0_86 = arith.constant 0 : index
    %260 = vector.load %arg11[%259, %c0_85, %c0_86] : memref<8x8x512xf32, #tpu.memory_space<vmem>>, vector<1x8x512xf32>
    %261 = vector.shape_cast %260 : vector<1x8x512xf32> to vector<8x512xf32>
    %c0_87 = arith.constant 0 : index
    %c0_88 = arith.constant 0 : index
    %262 = vector.load %arg4[%c0_87, %c0_88] : memref<128x512xf32, #tpu.memory_space<vmem>>, vector<128x512xf32>
    %cst_89 = arith.constant dense<0.000000e+00> : vector<8x512xf32>
    %263 = tpu.matmul %254, %262, %cst_89 {dimension_numbers = #tpu.dot_dimension_numbers<[1], [0], [0], [1], [0, 0, 1, 1], [], []>} : vector<8x128xf32>, vector<128x512xf32>, vector<8x512xf32> -> vector<8x512xf32>
    %264 = arith.addf %261, %263 : vector<8x512xf32>
    %265 = vector.extract_strided_slice %264 {offsets = [0, 0], sizes = [8, 128], strides = [1, 1]} : vector<8x512xf32> to vector<8x128xf32>
    %266 = arith.negf %265 : vector<8x128xf32>
    %267 = math.exp %266 : vector<8x128xf32>
    %cst_90 = arith.constant 1.000000e+00 : f32
    %268 = vector.broadcast %cst_90 : f32 to vector<8x128xf32>
    %269 = arith.addf %268, %267 : vector<8x128xf32>
    %270 = arith.divf %268, %269 : vector<8x128xf32>
    %271 = vector.extract_strided_slice %264 {offsets = [0, 128], sizes = [8, 128], strides = [1, 1]} : vector<8x512xf32> to vector<8x128xf32>
    %272 = arith.negf %271 : vector<8x128xf32>
    %273 = math.exp %272 : vector<8x128xf32>
    %cst_91 = arith.constant 1.000000e+00 : f32
    %274 = vector.broadcast %cst_91 : f32 to vector<8x128xf32>
    %275 = arith.addf %274, %273 : vector<8x128xf32>
    %276 = arith.divf %274, %275 : vector<8x128xf32>
    %277 = vector.extract_strided_slice %264 {offsets = [0, 256], sizes = [8, 128], strides = [1, 1]} : vector<8x512xf32> to vector<8x128xf32>
    %278 = math.tanh %277 : vector<8x128xf32>
    %279 = vector.extract_strided_slice %264 {offsets = [0, 384], sizes = [8, 128], strides = [1, 1]} : vector<8x512xf32> to vector<8x128xf32>
    %280 = arith.negf %279 : vector<8x128xf32>
    %281 = math.exp %280 : vector<8x128xf32>
    %cst_92 = arith.constant 1.000000e+00 : f32
    %282 = vector.broadcast %cst_92 : f32 to vector<8x128xf32>
    %283 = arith.addf %282, %281 : vector<8x128xf32>
    %284 = arith.divf %282, %283 : vector<8x128xf32>
    %285 = arith.mulf %276, %252 : vector<8x128xf32>
    %286 = arith.mulf %270, %278 : vector<8x128xf32>
    %287 = arith.addf %285, %286 : vector<8x128xf32>
    %288 = math.tanh %287 : vector<8x128xf32>
    %289 = arith.mulf %284, %288 : vector<8x128xf32>
    %290 = arith.index_cast %c7_i32 : i32 to index
    %c0_93 = arith.constant 0 : index
    %c0_94 = arith.constant 0 : index
    %291 = vector.load %arg8[%290, %c0_93, %c0_94] : memref<8x8x128xf32, #tpu.memory_space<vmem>>, vector<1x8x128xf32>
    %292 = vector.shape_cast %291 : vector<1x8x128xf32> to vector<8x128xf32>
    %293 = vector.shape_cast %289 : vector<8x128xf32> to vector<1x8x128xf32>
    tpu.vector_store %arg8[%290, %c0_93, %c0_94], %293 {strides = array<i32>} : memref<8x8x128xf32, #tpu.memory_space<vmem>>, vector<1x8x128xf32>,
    %c8_i32 = arith.constant 8 : i32
    %c0_95 = arith.constant 0 : index
    %c0_96 = arith.constant 0 : index
    %294 = vector.load %arg12[%c0_95, %c0_96] : memref<8x128xf32, #tpu.memory_space<vmem>>, vector<8x128xf32>
    tpu.vector_store %arg12[%c0_95, %c0_96], %289 {strides = array<i32>} : memref<8x128xf32, #tpu.memory_space<vmem>>, vector<8x128xf32>,
    %c0_97 = arith.constant 0 : index
    %c0_98 = arith.constant 0 : index
    %295 = vector.load %arg13[%c0_97, %c0_98] : memref<8x128xf32, #tpu.memory_space<vmem>>, vector<8x128xf32>
    tpu.vector_store %arg13[%c0_97, %c0_98], %287 {strides = array<i32>} : memref<8x128xf32, #tpu.memory_space<vmem>>, vector<8x128xf32>,
    %c0_i32_99 = arith.constant 0 : i32
    %296 = arith.cmpi eq, %arg1, %c0_i32_99 : i32
    %297 = arith.extui %296 : i1 to i32
    %c0_i32_100 = arith.constant 0 : i32
    %298 = arith.cmpi ne, %297, %c0_i32_100 : i32
    scf.if %298 {
      %c0_101 = arith.constant 0 : index
      %c0_102 = arith.constant 0 : index
      %299 = vector.load %arg9[%c0_101, %c0_102] : memref<8x128xf32, #tpu.memory_space<vmem>>, vector<8x128xf32>
      tpu.vector_store %arg9[%c0_101, %c0_102], %289 {strides = array<i32>} : memref<8x128xf32, #tpu.memory_space<vmem>>, vector<8x128xf32>,
      %c0_103 = arith.constant 0 : index
      %c0_104 = arith.constant 0 : index
      %300 = vector.load %arg10[%c0_103, %c0_104] : memref<8x128xf32, #tpu.memory_space<vmem>>, vector<8x128xf32>
      tpu.vector_store %arg10[%c0_103, %c0_104], %287 {strides = array<i32>} : memref<8x128xf32, #tpu.memory_space<vmem>>, vector<8x128xf32>,
    } else {
    }
    return
  }
  func.func @transform_0(%arg0: i32, %arg1: i32) -> (i32, i32, i32) {
    %c0_i32 = arith.constant 0 : i32
    %c0_i32_0 = arith.constant 0 : i32
    return %arg1, %arg0, %c0_i32 : i32, i32, i32
  }
  func.func @transform_1(%arg0: i32, %arg1: i32) -> (i32, i32) {
    %c0_i32 = arith.constant 0 : i32
    %c0_i32_0 = arith.constant 0 : i32
    %c0_i32_1 = arith.constant 0 : i32
    return %c0_i32, %c0_i32_0 : i32, i32
  }
  func.func @transform_2(%arg0: i32, %arg1: i32) -> (i32, i32) {
    %c0_i32 = arith.constant 0 : i32
    %c0_i32_0 = arith.constant 0 : i32
    %c0_i32_1 = arith.constant 0 : i32
    return %c0_i32, %c0_i32_0 : i32, i32
  }
  func.func @transform_3(%arg0: i32, %arg1: i32) -> (i32, i32) {
    %c0_i32 = arith.constant 0 : i32
    %c0_i32_0 = arith.constant 0 : i32
    %c0_i32_1 = arith.constant 0 : i32
    return %c0_i32, %c0_i32_0 : i32, i32
  }
  func.func @transform_4(%arg0: i32, %arg1: i32) -> (i32, i32) {
    %c0_i32 = arith.constant 0 : i32
    %c0_i32_0 = arith.constant 0 : i32
    return %arg0, %c0_i32 : i32, i32
  }
  func.func @transform_5(%arg0: i32, %arg1: i32) -> (i32, i32) {
    %c0_i32 = arith.constant 0 : i32
    %c0_i32_0 = arith.constant 0 : i32
    return %arg0, %c0_i32 : i32, i32
  }
  func.func @transform_6(%arg0: i32, %arg1: i32) -> (i32, i32, i32) {
    %c0_i32 = arith.constant 0 : i32
    %c0_i32_0 = arith.constant 0 : i32
    return %arg1, %arg0, %c0_i32 : i32, i32, i32
  }
  func.func @transform_7(%arg0: i32, %arg1: i32) -> (i32, i32) {
    %c0_i32 = arith.constant 0 : i32
    %c0_i32_0 = arith.constant 0 : i32
    return %arg0, %c0_i32 : i32, i32
  }
  func.func @transform_8(%arg0: i32, %arg1: i32) -> (i32, i32) {
    %c0_i32 = arith.constant 0 : i32
    %c0_i32_0 = arith.constant 0 : i32
    return %arg0, %c0_i32 : i32, i32
  }
}

</mosaic_0001>

<bundles_post_ra>
// kernel: tpu_custom_call.1
= control target key start
LH: loop header
LB: loop body
LE: loop exit
PB: predicated region body
PF: predicated region fallthrough
CT: control target
= control target key end

     0   :  { %14 = vsyncpa [#allocation6], 0  ;;  %s3996_s0 = inlined_call_operand.hbm [shape: f32[8,8,32], index: 0, kind: input, shape index: {}]   ;;  %s3997_s1 = inlined_call_operand.hbm [shape: f32[32,512], index: 1, kind: input, shape index: {}]   ;;  %s3998_s2 = inlined_call_operand.hbm [shape: f32[128,512], index: 2, kind: input, shape index: {}]   ;;  %s3999_s3 = inlined_call_operand.hbm [shape: f32[1,512], index: 3, kind: input, shape index: {}]   ;;  %s4000_s4 = inlined_call_operand.vmem [shape: f32[8,128], index: 4, kind: input, shape index: {}]   ;;  %s4001_s5 = inlined_call_operand.vmem [shape: f32[8,128], index: 5, kind: input, shape index: {}]   ;;  %s4002_s6 = inlined_call_operand.hbm [shape: f32[8,8,128], index: 6, kind: output, shape index: {0}]   ;;  %s4003_s7 = inlined_call_operand.hbm [shape: f32[8,128], index: 7, kind: output, shape index: {1}]   ;;  %s4004_s8 = inlined_call_operand.hbm [shape: f32[8,128], index: 8, kind: output, shape index: {2}]  }
   0x1   :  { %15 = vsyncpa [#allocation9], 0 }
   0x2   :  { %16 = vsyncpa [#allocation12], 0 }
   0x3   :  { %17 = vsyncpa [#allocation7], 0 }
   0x4   :  { %18 = vsyncpa [#allocation15], 0  ;;  %s3335_s27 = smov [#allocation8]   ;;  %s3171_s9 = scalar_lea.hbm %s3997_s1, 2048 }
   0x5   :  { %s36_s28 = sshll.u32 %s3335_s27, 4  ;;  %p3172_p0 = scmp.ne.s32.totalorder %s3997_s1, %s3171_s9  ;;  %s37_s28 = int_to_ptr.vmem [resolvable:$true] %s36_s28 }
   0x6   :  { %p3175_p1 = scmp.lt.u32.totalorder %s3171_s9, %s3997_s1 }
   0x8   :  { %p3177_p2 = pnand %p3175_p1, %p3172_p0 }
   0xa   :  { %3180 = shalt.err (!%p3177_p2)
}
   0xb   :  { %s3181_s14 = scalar_lea.vmem %s37_s28, 2048  ;;  %p3186_p4 = scmp.lt.s32.totalorder %s37_s28, %s37_s28 }
   0xc   :  { %p3182_p3 = scmp.ne.s32.totalorder %s37_s28, %s3181_s14  ;;  %p3187_p5 = scmp.lt.s32.totalorder %s3181_s14, %s3181_s14 }
   0xe   :  { %p3188_p6 = por %p3187_p5, %p3186_p4 }
  0x10   :  { %p3189_p7 = pnand %p3188_p6, %p3182_p3 }
  0x12   :  { %3192 = shalt.err (!%p3189_p7)
}
  0x13   :  { %s3336_s15 = smov 512   ;;  %s3337_s16 = smov 32  }
  0x14   :  { %42 = dma.hbm_to_vmem [thread:$0]  %s3997_s1, 2048, %s37_s28, [#allocation9], %s3336_s15, %s3336_s15, %s3337_s16  }
  0x15   :  { %s3338_s19 = smov [#allocation5]   ;;  %s3193_s23 = scalar_lea.hbm %s3996_s0, 1024 }
  0x16   :  { %s24_s20 = sshll.u32 %s3338_s19, 4  ;;  %p3194_p8 = scmp.ne.s32.totalorder %s3996_s0, %s3193_s23  ;;  %s25_s20 = int_to_ptr.vmem [resolvable:$true] %s24_s20 }
  0x17   :  { %p3197_p9 = scmp.lt.u32.totalorder %s3193_s23, %s3996_s0 }
  0x19   :  { %p3199_p10 = pnand %p3197_p9, %p3194_p8 }
  0x1b   :  { %3202 = shalt.err (!%p3199_p10)
}
  0x1c   :  { %s3203_s29 = scalar_lea.vmem %s25_s20, 1024  ;;  %p3208_p12 = scmp.lt.s32.totalorder %s25_s20, %s25_s20 }
  0x1d   :  { %p3204_p11 = scmp.ne.s32.totalorder %s25_s20, %s3203_s29  ;;  %p3209_p13 = scmp.lt.s32.totalorder %s3203_s29, %s3203_s29 }
  0x1f   :  { %p3210_p0 = por %p3209_p13, %p3208_p12 }
  0x21   :  { %p3211_p1 = pnand %p3210_p0, %p3204_p11 }
  0x23   :  { %3214 = shalt.err (!%p3211_p1)
}
  0x24   :  { %s3339_s1 = smov 128   ;;  %s3340_s28 = smov 8  }
  0x25   :  { %30 = dma.hbm_to_vmem [thread:$0]  %s3996_s0, 1024, %s25_s20, [#allocation6], %s3339_s1, %s3339_s1, %s3340_s28  }
  0x26   :  { %s3341_s10 = smov [#allocation10]   ;;  %s3342_s12 = smov [#allocation11]  }
  0x27   :  { %s48_s11 = sshll.u32 %s3341_s10, 4  ;;  %s61_s13 = sshll.u32 %s3342_s12, 4  ;;  %s49_s11 = int_to_ptr.vmem [resolvable:$true] %s48_s11  ;;  %s62_s13 = int_to_ptr.vmem [resolvable:$true] %s61_s13 }
  0x28   :  { %s3215_s18 = scalar_lea.hbm %s3998_s2, 8192 }
  0x29   :  { %p3216_p2 = scmp.ne.s32.totalorder %s3998_s2, %s3215_s18  ;;  %p3219_p3 = scmp.lt.u32.totalorder %s3215_s18, %s3998_s2 }
  0x2b   :  { %p3221_p4 = pnand %p3219_p3, %p3216_p2 }
  0x2d   :  { %3224 = shalt.err (!%p3221_p4)
}
  0x2e   :  { %s3225_s0 = scalar_lea.vmem %s49_s11, 8192  ;;  %p3230_p6 = scmp.lt.s32.totalorder %s49_s11, %s49_s11 }
  0x2f   :  { %p3226_p5 = scmp.ne.s32.totalorder %s49_s11, %s3225_s0  ;;  %p3231_p7 = scmp.lt.s32.totalorder %s3225_s0, %s3225_s0 }
  0x31   :  { %p3232_p8 = por %p3231_p7, %p3230_p6 }
  0x33   :  { %p3233_p9 = pnand %p3232_p8, %p3226_p5 }
  0x35   :  { %3236 = shalt.err (!%p3233_p9)
}
  0x36   :  { %54 = dma.hbm_to_vmem [thread:$0]  %s3998_s2, 8192, %s49_s11, [#allocation9], %s3336_s15, %s3336_s15, %s3337_s16  }
  0x37   :  { %s3237_s27 = scalar_lea.hbm %s3999_s3, 64 }
  0x38   :  { %p3238_p10 = scmp.ne.s32.totalorder %s3999_s3, %s3237_s27  ;;  %p3241_p11 = scmp.lt.u32.totalorder %s3237_s27, %s3999_s3 }
  0x3a   :  { %p3243_p12 = pnand %p3241_p11, %p3238_p10 }
  0x3c   :  { %3246 = shalt.err (!%p3243_p12)
}
  0x3d   :  { %s3247_s12 = scalar_lea.vmem %s62_s13, 64  ;;  %p3252_p0 = scmp.lt.s32.totalorder %s62_s13, %s62_s13 }
  0x3e   :  { %p3248_p13 = scmp.ne.s32.totalorder %s62_s13, %s3247_s12  ;;  %p3253_p1 = scmp.lt.s32.totalorder %s3247_s12, %s3247_s12 }
  0x40   :  { %p3254_p2 = por %p3253_p1, %p3252_p0 }
  0x42   :  { %p3255_p3 = pnand %p3254_p2, %p3248_p13 }
  0x44   :  { %3258 = shalt.err (!%p3255_p3)
}
  0x45   :  { %64 = dma.hbm_to_vmem [thread:$0]  %s3999_s3, 64, %s62_s13, [#allocation12]  }
  0x46   :  { %3325 = dma.done.wait [#allocation6], 1024  }
  0x47   :  { %3326 = vsyncadd [#allocation6], 4294966272 }
  0x48   :  { %3327 = dma.done.wait [#allocation9], 10240  }
  0x49   :  { %3328 = vsyncadd [#allocation9], 4294957056 }
  0x4a   :  { %3329 = dma.done.wait [#allocation12], 64  }
  0x4b   :  { %3330 = vsyncadd [#allocation12], 4294967232  ;;  %v3343_v0 = vmov 0.0   ;;  %v98_v1 = vld [vmem:[#allocation8 + $0x8] sm:$0xff]  ;;  %v100_v3 = vld [vmem:[#allocation8 + $0x18] sm:$0xff]  ;;  %vm135_vm0 = vcmask 261120  }
  0x4c   :  { %224 = vmatprep.mubr.f32.mxu0 %v3343_v0  ;;  %337 = vmatprep.mubr.f32.mxu1 %v3343_v0  ;;  %v102_v2 = vld [vmem:[#allocation8 + $0x28] sm:$0xff]  ;;  %v104_v5 = vld [vmem:[#allocation8 + $0x38] sm:$0xff]  ;;  %v97_v6 = vld [vmem:[#allocation8] sm:$0xff]  ;;  %s3345_s14 = smov [#allocation13]   ;;  %s3346_s18 = smov [#allocation16]  }
  0x4d   :  { %v2439_v4 = vpack.c.bf16 %v102_v2, %v98_v1  ;;  %v101_v7 = vld [vmem:[#allocation8 + $0x20] sm:$0xff]  ;;  %v2447_v8 = vpack.c.bf16 %v104_v5, %v100_v3  ;;  %v99_v10 = vld [vmem:[#allocation8 + $0x10] sm:$0xff]  ;;  %v106_v12 = vld [vmem:[#allocation8 + $0x48] sm:$0xff]  ;;  %s2358_s17 = sshll.u32 %s3345_s14, 4  ;;  %s2381_s19 = sshll.u32 %s3346_s18, 4  ;;  %s3943_s17 = int_to_ptr.vmem [resolvable:$true] %s2358_s17  ;;  %s3945_s19 = int_to_ptr.vmem [resolvable:$true] %s2381_s19 }
  0x4e   :  { %v2441_v9 = vpack.c.bf16 %v101_v7, %v97_v6  ;;  %v103_v11 = vld [vmem:[#allocation8 + $0x30] sm:$0xff]  ;;  %v110_v14 = vld [vmem:[#allocation8 + $0x68] sm:$0xff]  ;;  %v108_v15 = vld [vmem:[#allocation8 + $0x58] sm:$0xff] }
  0x4f   :  { %2440 = vmatprep.subr.bf16.mxu0 %v2439_v4  ;;  %v2449_v13 = vpack.c.bf16 %v103_v11, %v99_v10  ;;  %v112_v16 = vld [vmem:[#allocation8 + $0x78] sm:$0xff]  ;;  %2448 = vmatprep.subr.bf16.mxu1 %v2447_v8  ;;  %v2443_v17 = vpack.c.bf16 %v110_v14, %v106_v12  ;;  %v105_v19 = vld [vmem:[#allocation8 + $0x40] sm:$0xff]  ;;  %v107_v21 = vld [vmem:[#allocation8 + $0x50] sm:$0xff] }
  0x50   :  { %2442 = vmatpush1.bf16.msra.mxu0 %v2441_v9  ;;  %v2451_v18 = vpack.c.bf16 %v112_v16, %v108_v15  ;;  %v109_v20 = vld [vmem:[#allocation8 + $0x60] sm:$0xff]  ;;  %v111_v23 = vld [vmem:[#allocation8 + $0x70] sm:$0xff]  ;;  %v425_v24 = vld [vmem:[#allocation10 + $0x8] sm:$0xff] }
  0x51   :  { %2450 = vmatpush1.bf16.msra.mxu1 %v2449_v13  ;;  %v2445_v22 = vpack.c.bf16 %v109_v20, %v105_v19  ;;  %2444 = vmatprep.subr.bf16.mxu0 %v2443_v17  ;;  %v2453_v25 = vpack.c.bf16 %v111_v23, %v107_v21  ;;  %v429_v26 = vld [vmem:[#allocation10 + $0x28] sm:$0xff]  ;;  %v427_v27 = vld [vmem:[#allocation10 + $0x18] sm:$0xff]  ;;  %v424_v31 = vld [vmem:[#allocation10] sm:$0xff] }
  0x52   :  { %2452 = vmatprep.subr.bf16.mxu1 %v2451_v18  ;;  %v431_v28 = vld [vmem:[#allocation10 + $0x38] sm:$0xff]  ;;  %v3451_v29 = vpack.c.bf16 %v429_v26, %v425_v24  ;;  %v428_v32 = vld [vmem:[#allocation10 + $0x20] sm:$0xff]  ;;  %v426_v33 = vld [vmem:[#allocation10 + $0x10] sm:$0xff] }
  0x53   :  { %v3453_v30 = vpack.c.bf16 %v431_v28, %v427_v27  ;;  %v89_v34 = vld [vmem:[#allocation5] sm:$0xff]  ;;  %v3455_v35 = vpack.c.bf16 %v428_v32, %v424_v31  ;;  %v430_v36 = vld [vmem:[#allocation10 + $0x30] sm:$0xff]  ;;  %v433_v37 = vld [vmem:[#allocation10 + $0x48] sm:$0xff] }
  0x54   :  { %2446 = vmatpush1.bf16.msra.mxu0 %v2445_v22  ;;  %v3458_v38 = vpack.c.bf16 %v430_v36, %v426_v33  ;;  %v437_v39 = vld [vmem:[#allocation10 + $0x68] sm:$0xff]  ;;  %v435_v40 = vld [vmem:[#allocation10 + $0x58] sm:$0xff]  ;;  %v432_v43 = vld [vmem:[#allocation10 + $0x40] sm:$0xff] }
  0x55   :  { %2454 = vmatpush1.bf16.msra.mxu1 %v2453_v25  ;;  %2456 = vmatprep.subr.bf16.mxu0 %v3451_v29  ;;  %v439_v41 = vld [vmem:[#allocation10 + $0x78] sm:$0xff]  ;;  %v3461_v42 = vpack.c.bf16 %v437_v39, %v433_v37  ;;  %v436_v44 = vld [vmem:[#allocation10 + $0x60] sm:$0xff]  ;;  %v434_v45 = vld [vmem:[#allocation10 + $0x50] sm:$0xff] }
  0x56   :  { %2488 = vmatprep.subr.bf16.mxu1 %v3453_v30  ;;  %v90_v46 = vld [vmem:[#allocation5 + $0x8] sm:$0xff]  ;;  %v3464_v47 = vpack.c.bf16 %v439_v41, %v435_v40  ;;  %v438_v48 = vld [vmem:[#allocation10 + $0x70] sm:$0xff]  ;;  %v3468_v50 = vpack.c.bf16 %v436_v44, %v432_v43  ;;  %v443_v52 = vld [vmem:[#allocation10 + $0x98] sm:$0xff] }
  0x57   :  { %2399 = vmatmul.mubr.msk.f32.vlgmr.msra.gmra.mrb[0].mxu0 %vm135_vm0, %v89_v34  ;;  %v441_v49 = vld [vmem:[#allocation10 + $0x88] sm:$0xff]  ;;  %v447_v53 = vld [vmem:[#allocation10 + $0xb8] sm:$0xff]  ;;  %v3472_v54 = vpack.c.bf16 %v438_v48, %v434_v45  ;;  %v440_v55 = vld [vmem:[#allocation10 + $0x80] sm:$0xff] }
  0x58   :  { %2407 = vmatmul.mubr.msk.f32.vlgmr.msra.gmra.mrb[0].mxu1 %vm135_vm0, %v89_v34  ;;  %2458 = vmatpush1.bf16.msra.mxu0 %v3455_v35  ;;  %v445_v51 = vld [vmem:[#allocation10 + $0xa8] sm:$0xff]  ;;  %v444_v56 = vld [vmem:[#allocation10 + $0xa0] sm:$0xff]  ;;  %v442_v58 = vld [vmem:[#allocation10 + $0x90] sm:$0xff]  ;;  %v3480_v60 = vpack.c.bf16 %v447_v53, %v443_v52 }
  0x59   :  { %2490 = vmatpush1.bf16.msra.mxu1 %v3458_v38  ;;  %230 = vmatprep.mubr.f32.mxu0 %v3343_v0  ;;  %v3476_v57 = vpack.c.bf16 %v445_v51, %v441_v49  ;;  %v446_v59 = vld [vmem:[#allocation10 + $0xb0] sm:$0xff]  ;;  %v449_v61 = vld [vmem:[#allocation10 + $0xc8] sm:$0xff]  ;;  %v3484_v1 = vpack.c.bf16 %v444_v56, %v440_v55  ;;  %v451_v2 = vld [vmem:[#allocation10 + $0xd8] sm:$0xff] }
  0x5a   :  { %343 = vmatprep.mubr.f32.mxu1 %v3343_v0  ;;  %2460 = vmatprep.subr.bf16.mxu0 %v3461_v42  ;;  %v453_v62 = vld [vmem:[#allocation10 + $0xe8] sm:$0xff]  ;;  %v91_v63 = vld [vmem:[#allocation5 + $0x10] sm:$0xff]  ;;  %v455_v3 = vld [vmem:[#allocation10 + $0xf8] sm:$0xff]  ;;  %v3488_v4 = vpack.c.bf16 %v446_v59, %v442_v58 }
  0x5b   :  { %2400 = vmatmul.mubr.msk.f32.gmra.mrb[2].mxu0 %vm135_vm0, %v90_v46  ;;  %2492 = vmatprep.subr.bf16.mxu1 %v3464_v47  ;;  %v448_v5 = vld [vmem:[#allocation10 + $0xc0] sm:$0xff]  ;;  %v3492_v7 = vpack.c.bf16 %v453_v62, %v449_v61  ;;  %v450_v8 = vld [vmem:[#allocation10 + $0xd0] sm:$0xff]  ;;  %v3496_v10 = vpack.c.bf16 %v455_v3, %v451_v2  ;;  %v457_v11 = vld [vmem:[#allocation10 + $0x108] sm:$0xff] }
  0x5c   :  { %2408 = vmatmul.mubr.msk.f32.gmra.mrb[2].mxu1 %vm135_vm0, %v90_v46  ;;  %2462 = vmatpush1.bf16.msra.mxu0 %v3468_v50  ;;  %v452_v6 = vld [vmem:[#allocation10 + $0xe0] sm:$0xff]  ;;  %v454_v9 = vld [vmem:[#allocation10 + $0xf0] sm:$0xff]  ;;  %v461_v12 = vld [vmem:[#allocation10 + $0x128] sm:$0xff] }
  0x5d   :  { %2494 = vmatpush1.bf16.msra.mxu1 %v3472_v54  ;;  %236 = vmatprep.mubr.f32.mxu0 %v3343_v0  ;;  %v92_v13 = vld [vmem:[#allocation5 + $0x18] sm:$0xff]  ;;  %v3500_v14 = vpack.c.bf16 %v452_v6, %v448_v5  ;;  %v3504_v17 = vpack.c.bf16 %v454_v9, %v450_v8  ;;  %v456_v18 = vld [vmem:[#allocation10 + $0x100] sm:$0xff]  ;;  %v3508_v20 = vpack.c.bf16 %v461_v12, %v457_v11  ;;  %v458_v21 = vld [vmem:[#allocation10 + $0x110] sm:$0xff] }
  0x5e   :  { %349 = vmatprep.mubr.f32.mxu1 %v3343_v0  ;;  %2464 = vmatprep.subr.bf16.mxu0 %v3476_v57  ;;  %v459_v15 = vld [vmem:[#allocation10 + $0x118] sm:$0xff]  ;;  %v460_v19 = vld [vmem:[#allocation10 + $0x120] sm:$0xff]  ;;  %v462_v22 = vld [vmem:[#allocation10 + $0x130] sm:$0xff] }
  0x5f   :  { %2401 = vmatmul.mubr.msk.f32.gmra.mrb[4].mxu0 %vm135_vm0, %v91_v63  ;;  %2496 = vmatprep.subr.bf16.mxu1 %v3480_v60  ;;  %v463_v16 = vld [vmem:[#allocation10 + $0x138] sm:$0xff]  ;;  %v465_v24 = vld [vmem:[#allocation10 + $0x148] sm:$0xff]  ;;  %v93_v26 = vld [vmem:[#allocation5 + $0x20] sm:$0xff]  ;;  %v3516_v27 = vpack.c.bf16 %v460_v19, %v456_v18  ;;  %v3520_v32 = vpack.c.bf16 %v462_v22, %v458_v21  ;;  %v115_v21 = vlaneseq }
  0x60   :  { %2409 = vmatmul.mubr.msk.f32.gmra.mrb[4].mxu1 %vm135_vm0, %v91_v63  ;;  %2466 = vmatpush1.bf16.msra.mxu0 %v3484_v1  ;;  %v3512_v23 = vpack.c.bf16 %v463_v16, %v459_v15  ;;  %v469_v25 = vld [vmem:[#allocation10 + $0x168] sm:$0xff]  ;;  %v467_v28 = vld [vmem:[#allocation10 + $0x158] sm:$0xff]  ;;  %v464_v33 = vld [vmem:[#allocation10 + $0x140] sm:$0xff] }
  0x61   :  { %2498 = vmatpush1.bf16.msra.mxu1 %v3488_v4  ;;  %242 = vmatprep.mubr.f32.mxu0 %v3343_v0  ;;  %v471_v31 = vld [vmem:[#allocation10 + $0x178] sm:$0xff]  ;;  %v468_v34 = vld [vmem:[#allocation10 + $0x160] sm:$0xff]  ;;  %v3524_v36 = vpack.c.bf16 %v469_v25, %v465_v24  ;;  %v466_v37 = vld [vmem:[#allocation10 + $0x150] sm:$0xff]  ;;  %v116_v22 = vshrl.u32 %v115_v21, 7 }
  0x62   :  { %355 = vmatprep.mubr.f32.mxu1 %v3343_v0  ;;  %2468 = vmatprep.subr.bf16.mxu0 %v3492_v7  ;;  %v470_v39 = vld [vmem:[#allocation10 + $0x170] sm:$0xff]  ;;  %v3528_v40 = vpack.c.bf16 %v471_v31, %v467_v28  ;;  %v473_v41 = vld [vmem:[#allocation10 + $0x188] sm:$0xff]  ;;  %v3532_v45 = vpack.c.bf16 %v468_v34, %v464_v33  ;;  %v475_v46 = vld [vmem:[#allocation10 + $0x198] sm:$0xff] }
  0x63   :  { %2402 = vmatmul.mubr.msk.f32.gmra.mrb[6].mxu0 %vm135_vm0, %v92_v13  ;;  %2500 = vmatprep.subr.bf16.mxu1 %v3496_v10  ;;  %v477_v43 = vld [vmem:[#allocation10 + $0x1a8] sm:$0xff]  ;;  %v479_v48 = vld [vmem:[#allocation10 + $0x1b8] sm:$0xff]  ;;  %v3536_v49 = vpack.c.bf16 %v470_v39, %v466_v37  ;;  %v472_v51 = vld [vmem:[#allocation10 + $0x180] sm:$0xff]  ;;  %v117_v24 = vsub.s32 0, %v116_v22  ;;  %v129_v34 = vsub.s32 3, %v116_v22 }
  0x64   :  { %2410 = vmatmul.mubr.msk.f32.gmra.mrb[6].mxu1 %vm135_vm0, %v92_v13  ;;  %2470 = vmatpush1.bf16.msra.mxu0 %v3500_v14  ;;  %v94_v44 = vld [vmem:[#allocation5 + $0x28] sm:$0xff]  ;;  %v476_v52 = vld [vmem:[#allocation10 + $0x1a0] sm:$0xff]  ;;  %v3540_v53 = vpack.c.bf16 %v477_v43, %v473_v41  ;;  %v474_v55 = vld [vmem:[#allocation10 + $0x190] sm:$0xff]  ;;  %v3544_v58 = vpack.c.bf16 %v479_v48, %v475_v46  ;;  %v125_v48 = vsub.s32 2, %v116_v22 }
  0x65   :  { %2502 = vmatpush1.bf16.msra.mxu1 %v3504_v17  ;;  %248 = vmatprep.mubr.f32.mxu0 %v3343_v0  ;;  %v478_v56 = vld [vmem:[#allocation10 + $0x1b0] sm:$0xff]  ;;  %v481_v59 = vld [vmem:[#allocation10 + $0x1c8] sm:$0xff]  ;;  %v3548_v63 = vpack.c.bf16 %v476_v52, %v472_v51  ;;  %v483_v2 = vld [vmem:[#allocation10 + $0x1d8] sm:$0xff] }
  0x66   :  { %361 = vmatprep.mubr.f32.mxu1 %v3343_v0  ;;  %2472 = vmatprep.subr.bf16.mxu0 %v3508_v20  ;;  %v485_v61 = vld [vmem:[#allocation10 + $0x1e8] sm:$0xff]  ;;  %v95_v62 = vld [vmem:[#allocation5 + $0x30] sm:$0xff]  ;;  %v487_v3 = vld [vmem:[#allocation10 + $0x1f8] sm:$0xff]  ;;  %v3552_v5 = vpack.c.bf16 %v478_v56, %v474_v55 }
  0x67   :  { %2403 = vmatmul.mubr.msk.f32.gmra.mrb[8].mxu0 %vm135_vm0, %v93_v26  ;;  %2504 = vmatprep.subr.bf16.mxu1 %v3512_v23  ;;  %v480_v6 = vld [vmem:[#allocation10 + $0x1c0] sm:$0xff]  ;;  %v3556_v9 = vpack.c.bf16 %v485_v61, %v481_v59  ;;  %v482_v11 = vld [vmem:[#allocation10 + $0x1d0] sm:$0xff]  ;;  %v3560_v13 = vpack.c.bf16 %v487_v3, %v483_v2  ;;  %v96_v15 = vld [vmem:[#allocation5 + $0x38] sm:$0xff] }
  0x68   :  { %2411 = vmatmul.mubr.msk.f32.gmra.mrb[8].mxu1 %vm135_vm0, %v93_v26  ;;  %2474 = vmatpush1.bf16.msra.mxu0 %v3516_v27  ;;  %v484_v8 = vld [vmem:[#allocation10 + $0x1e0] sm:$0xff]  ;;  %v486_v12 = vld [vmem:[#allocation10 + $0x1f0] sm:$0xff]  ;;  %v121_v26 = vsub.s32 1, %v116_v22 }
  0x69   :  { %2506 = vmatpush1.bf16.msra.mxu1 %v3520_v32  ;;  %254 = vmatprep.mubr.f32.mxu0 %v3343_v0  ;;  %v3564_v16 = vpack.c.bf16 %v484_v8, %v480_v6  ;;  %v3568_v18 = vpack.c.bf16 %v486_v12, %v482_v11  ;;  %v85_v19 = vld [vmem:[%s4000_s4] sm:$0xff] }
  0x6a   :  { %367 = vmatprep.mubr.f32.mxu1 %v3343_v0  ;;  %2476 = vmatprep.subr.bf16.mxu0 %v3524_v36  ;;  %v113_v25 = vld [vmem:[#allocation11] sm:$0xf] }
  0x6b   :  { %2404 = vmatmul.mubr.msk.f32.gmra.mrb[10].mxu0 %vm135_vm0, %v94_v44  ;;  %2508 = vmatprep.subr.bf16.mxu1 %v3528_v40  ;;  %v3618_v28 = vrot.slane %v113_v25, %v117_v24  ;;  %v3620_v31 = vrot.slane %v113_v25, %v121_v26  ;;  %v3624_v46 = vrot.slane %v113_v25, %v129_v34  ;;  %v87_v8 = vld [vmem:[%s4001_s5] sm:$0xff]  ;;  %s3344_s5 = smov [#allocation14]  }
  0x6c   :  { %2412 = vmatmul.mubr.msk.f32.gmra.mrb[10].mxu1 %vm135_vm0, %v94_v44  ;;  %2478 = vmatpush1.bf16.msra.mxu0 %v3532_v45  ;;  %v3627_v52 = vrot.slane %v113_v25, %v125_v48  ;;  %s2371_s13 = sshll.u32 %s3344_s5, 4  ;;  %s2372_s13 = int_to_ptr.vmem [resolvable:$true] %s2371_s13 }
  0x6d   :  { %2510 = vmatpush1.bf16.msra.mxu1 %v3536_v49  ;;  %260 = vmatprep.mubr.f32.mxu0 %v3343_v0  ;;  %s3259_s21 = scalar_lea.vmem %s2372_s13, 128  ;;  %p3264_p5 = scmp.lt.s32.totalorder %s2372_s13, %s2372_s13 }
  0x6e   :  { %373 = vmatprep.mubr.f32.mxu1 %v3343_v0  ;;  %2480 = vmatprep.subr.bf16.mxu0 %v3540_v53  ;;  %p3260_p4 = scmp.ne.s32.totalorder %s2372_s13, %s3259_s21  ;;  %p3265_p6 = scmp.lt.s32.totalorder %s3259_s21, %s3259_s21 }
  0x6f   :  { %2405 = vmatmul.mubr.msk.f32.gmra.mrb[12].mxu0 %vm135_vm0, %v95_v62  ;;  %2512 = vmatprep.subr.bf16.mxu1 %v3544_v58 }
  0x70   :  { %2413 = vmatmul.mubr.msk.f32.gmra.mrb[12].mxu1 %vm135_vm0, %v95_v62  ;;  %2482 = vmatpush1.bf16.msra.mxu0 %v3548_v63  ;;  %p3266_p7 = por %p3265_p6, %p3264_p5 }
  0x71   :  { %2514 = vmatpush1.bf16.msra.mxu1 %v3552_v5  ;;  %266 = vmatprep.mubr.f32.mxu0 %v3343_v0 }
  0x72   :  { %379 = vmatprep.mubr.f32.mxu1 %v3343_v0  ;;  %2484 = vmatprep.subr.bf16.mxu0 %v3556_v9  ;;  %p3267_p8 = pnand %p3266_p7, %p3260_p4 }
  0x73   :  { %2406 = vmatmul.mubr.msk.f32.gmra.mrb[14].mxu0 %vm135_vm0, %v96_v15  ;;  %2516 = vmatprep.subr.bf16.mxu1 %v3560_v13 }
  0x74   :  { %2414 = vmatmul.mubr.msk.f32.gmra.mrb[14].mxu1 %vm135_vm0, %v96_v15  ;;  %2486 = vmatpush1.bf16.msra.mxu0 %v3564_v16 }
  0x75   :  { %2518 = vmatpush1.bf16.msra.mxu1 %v3568_v18  ;;  %552 = vmatprep.mubr.f32.mxu0 %v3343_v0 }
  0x76   :  { %623 = vmatprep.mubr.f32.mxu1 %v3343_v0  ;;  %2520 = vmatprep.subr.bf16.mxu0 %v3451_v29 }
  0x77   :  { %553 = vmatmul.mubr.f32.vlgmr.msra.gmra.mrb[0].mxu0 %v85_v19  ;;  %2552 = vmatprep.subr.bf16.mxu1 %v3453_v30 }
  0x78   :  { %624 = vmatmul.mubr.f32.vlgmr.msra.gmra.mrb[0].mxu1 %v85_v19  ;;  %2522 = vmatpush1.bf16.msra.mxu0 %v3455_v35 }
  0x79   :  { %2554 = vmatpush1.bf16.msra.mxu1 %v3458_v38  ;;  %2524 = vmatprep.subr.bf16.mxu0 %v3461_v42 }
  0x7a   :  { %2556 = vmatprep.subr.bf16.mxu1 %v3464_v47  ;;  %792 = vmatprep.mubr.f32.mxu0 %v3343_v0 }
  0x7b   :  { %863 = vmatprep.mubr.f32.mxu1 %v3343_v0 }
  0x7c   :  { %2526 = vmatpush1.bf16.msra.mxu0 %v3468_v50 }
  0x7d   :  { %2558 = vmatpush1.bf16.msra.mxu1 %v3472_v54  ;;  %2528 = vmatprep.subr.bf16.mxu0 %v3476_v57 }
  0x7e   :  { %2560 = vmatprep.subr.bf16.mxu1 %v3480_v60 }
  0x80   :  { %2530 = vmatpush1.bf16.msra.mxu0 %v3484_v1 }
  0x81   :  { %2562 = vmatpush1.bf16.msra.mxu1 %v3488_v4  ;;  %2532 = vmatprep.subr.bf16.mxu0 %v3492_v7 }
  0x82   :  { %2564 = vmatprep.subr.bf16.mxu1 %v3496_v10 }
  0x84   :  { %2534 = vmatpush1.bf16.msra.mxu0 %v3500_v14 }
  0x85   :  { %2566 = vmatpush1.bf16.msra.mxu1 %v3504_v17  ;;  %2536 = vmatprep.subr.bf16.mxu0 %v3508_v20 }
  0x86   :  { %2568 = vmatprep.subr.bf16.mxu1 %v3512_v23 }
  0x88   :  { %2538 = vmatpush1.bf16.msra.mxu0 %v3516_v27 }
  0x89   :  { %2570 = vmatpush1.bf16.msra.mxu1 %v3520_v32  ;;  %2540 = vmatprep.subr.bf16.mxu0 %v3524_v36 }
  0x8a   :  { %2572 = vmatprep.subr.bf16.mxu1 %v3528_v40 }
  0x8c   :  { %2542 = vmatpush1.bf16.msra.mxu0 %v3532_v45 }
  0x8d   :  { %2574 = vmatpush1.bf16.msra.mxu1 %v3536_v49  ;;  %2544 = vmatprep.subr.bf16.mxu0 %v3540_v53 }
  0x8e   :  { %2576 = vmatprep.subr.bf16.mxu1 %v3544_v58 }
  0x90   :  { %2546 = vmatpush1.bf16.msra.mxu0 %v3548_v63 }
  0x91   :  { %2578 = vmatpush1.bf16.msra.mxu1 %v3552_v5  ;;  %2548 = vmatprep.subr.bf16.mxu0 %v3556_v9 }
  0x92   :  { %2580 = vmatprep.subr.bf16.mxu1 %v3560_v13 }
  0x94   :  { %2550 = vmatpush1.bf16.msra.mxu0 %v3564_v16 }
  0x95   :  { %2582 = vmatpush1.bf16.msra.mxu1 %v3568_v18  ;;  %2584 = vmatprep.subr.bf16.mxu0 %v3451_v29 }
  0x96   :  { %2616 = vmatprep.subr.bf16.mxu1 %v3453_v30 }
 0x14a   :  { %v554_v33 = vpop.f32.mrb[0].mxu0 }
 0x14b   :  { %v2967_v37 = vadd.f32 %v554_v33, %v3618_v28  ;;  %v625_v39 = vpop.f32.mrb[0].mxu1  ;;  %v556_v41 = vpop.f32.mrb[1].mxu0 }
 0x14c   :  { %v2968_v43 = vadd.f32 %v556_v41, %v3620_v31  ;;  %v627_v29 = vpop.f32.mrb[1].mxu1  ;;  %v2983_v56 = vadd.f32 %v625_v39, %v3627_v52 }
 0x14d   :  { %v2415_v44 = vmul.f32 -1.442695, %v2967_v37  ;;  %v2984_v51 = vadd.f32 %v627_v29, %v3624_v46 }
 0x14e   :  { %v2416_v30 = vmul.f32 -1.442695, %v2968_v43 }
 0x14f   :  { %3043 = vpow2.f32 %v2415_v44  ;;  %v2417_v55 = vmul.f32 -1.442695, %v2984_v51 }
 0x150   :  { %3045 = vpow2.f32 %v2416_v30 }
 0x151   :  { %3047 = vpow2.f32 %v2417_v55 }
 0x152   :  { %3049 = vtanh.f32 %v2983_v56 }
 0x159   :  { %v3044_v59 = vpop.eup %3043 }
 0x15a   :  { %v3046_v61 = vpop.eup %3045  ;;  %v637_v62 = vadd.f32 1.0, %v3044_v59 }
 0x15b   :  { %v643_v2 = vadd.f32 1.0, %v3046_v61  ;;  %v3048_v3 = vpop.eup %3047 }
 0x15c   :  { %3051 = vrcp.f32 %v637_v62  ;;  %v3050_v6 = vpop.eup %3049  ;;  %v650_v19 = vadd.f32 1.0, %v3048_v3 }
 0x15d   :  { %3053 = vrcp.f32 %v643_v2 }
 0x15e   :  { %3055 = vrcp.f32 %v650_v19 }
 0x166   :  { %v3052_v11 = vpop.eup %3051 }
 0x167   :  { %v3054_v12 = vpop.eup %3053  ;;  %v654_v15 = vmul.f32 %v3052_v11, %v3050_v6  ;;  %v1147_v11 = vld [vmem:[#allocation10 + $0x8] sm:$0xff] }
 0x168   :  { %v653_v21 = vmul.f32 %v3054_v12, %v87_v8  ;;  %v3056_v24 = vpop.eup %3055  ;;  %v1151_v12 = vld [vmem:[#allocation10 + $0x28] sm:$0xff] }
 0x169   :  { %v3678_v19 = vpack.c.bf16 %v1151_v12, %v1147_v11  ;;  %v1405_v11 = vld [vmem:[#allocation10 + $0x90] sm:$0xff] }
 0x16a   :  { %v3633_v22 = vadd.f32 %v654_v15, %v653_v21  ;;  %v1149_v15 = vld [vmem:[#allocation10 + $0x18] sm:$0xff]  ;;  %v1409_v12 = vld [vmem:[#allocation10 + $0xb0] sm:$0xff] }
 0x16b   :  { %v1153_v21 = vld [vmem:[#allocation10 + $0x38] sm:$0xff] }
 0x16c   :  { %3057 = vtanh.f32 %v3633_v22 }
 0x176   :  { %v3058_v25 = vpop.eup %3057 }
 0x177   :  { %v657_v26 = vmul.f32 %v3058_v25, %v3056_v24  ;;  %v1150_v24 = vld [vmem:[#allocation10 + $0x20] sm:$0xff]  ;;  %v3680_v25 = vpack.c.bf16 %v1153_v21, %v1149_v15  ;;  %v3751_v15 = vpack.c.bf16 %v1409_v12, %v1405_v11  ;;  %v1412_v21 = vld [vmem:[#allocation10 + $0xc8] sm:$0xff]  ;;  %v1437_v11 = vld [vmem:[#allocation10 + $0x190] sm:$0xff] }
 0x179   :  { %658 = vst [vmem:[#allocation13] sm:$0xff] %v657_v26  ;;  %793 = vmatmul.mubr.f32.vlgmr.msra.gmra.mrb[2].mxu0 %v657_v26  ;;  %864 = vmatmul.mubr.f32.vlgmr.msra.gmra.mrb[2].mxu1 %v657_v26 }
 0x17a   :  { %2586 = vmatpush1.bf16.msra.mxu0 %v3455_v35  ;;  %2618 = vmatpush1.bf16.msra.mxu1 %v3458_v38 }
 0x17b   :  { %2588 = vmatprep.subr.bf16.mxu0 %v3461_v42  ;;  %2620 = vmatprep.subr.bf16.mxu1 %v3464_v47 }
 0x17c   :  { %1033 = vmatprep.mubr.f32.mxu0 %v3343_v0  ;;  %1104 = vmatprep.mubr.f32.mxu1 %v3343_v0 }
 0x17e   :  { %2590 = vmatpush1.bf16.msra.mxu0 %v3468_v50  ;;  %2622 = vmatpush1.bf16.msra.mxu1 %v3472_v54 }
 0x17f   :  { %2592 = vmatprep.subr.bf16.mxu0 %v3476_v57  ;;  %2624 = vmatprep.subr.bf16.mxu1 %v3480_v60 }
 0x182   :  { %2594 = vmatpush1.bf16.msra.mxu0 %v3484_v1  ;;  %2626 = vmatpush1.bf16.msra.mxu1 %v3488_v4 }
 0x183   :  { %2596 = vmatprep.subr.bf16.mxu0 %v3492_v7  ;;  %2628 = vmatprep.subr.bf16.mxu1 %v3496_v10 }
 0x186   :  { %2598 = vmatpush1.bf16.msra.mxu0 %v3500_v14  ;;  %2630 = vmatpush1.bf16.msra.mxu1 %v3504_v17 }
 0x187   :  { %2600 = vmatprep.subr.bf16.mxu0 %v3508_v20  ;;  %2632 = vmatprep.subr.bf16.mxu1 %v3512_v23 }
 0x18a   :  { %2602 = vmatpush1.bf16.msra.mxu0 %v3516_v27  ;;  %2634 = vmatpush1.bf16.msra.mxu1 %v3520_v32 }
 0x18b   :  { %2604 = vmatprep.subr.bf16.mxu0 %v3524_v36  ;;  %2636 = vmatprep.subr.bf16.mxu1 %v3528_v40 }
 0x18e   :  { %2606 = vmatpush1.bf16.msra.mxu0 %v3532_v45  ;;  %2638 = vmatpush1.bf16.msra.mxu1 %v3536_v49 }
 0x18f   :  { %2608 = vmatprep.subr.bf16.mxu0 %v3540_v53  ;;  %2640 = vmatprep.subr.bf16.mxu1 %v3544_v58 }
 0x192   :  { %2610 = vmatpush1.bf16.msra.mxu0 %v3548_v63  ;;  %2642 = vmatpush1.bf16.msra.mxu1 %v3552_v5 }
 0x193   :  { %2612 = vmatprep.subr.bf16.mxu0 %v3556_v9  ;;  %2644 = vmatprep.subr.bf16.mxu1 %v3560_v13 }
 0x196   :  { %2614 = vmatpush1.bf16.msra.mxu0 %v3564_v16  ;;  %2646 = vmatpush1.bf16.msra.mxu1 %v3568_v18 }
 0x197   :  { %2648 = vmatprep.subr.bf16.mxu0 %v3678_v19  ;;  %2680 = vmatprep.subr.bf16.mxu1 %v3680_v25 }
 0x24c   :  { %v794_v35 = vpop.f32.mrb[2].mxu0  ;;  %v865_v38 = vpop.f32.mrb[2].mxu1 }
 0x24d   :  { %v2969_v42 = vadd.f32 %v794_v35, %v3618_v28  ;;  %v796_v47 = vpop.f32.mrb[3].mxu0  ;;  %v867_v50 = vpop.f32.mrb[3].mxu1  ;;  %v2985_v41 = vadd.f32 %v865_v38, %v3627_v52  ;;  %v1148_v35 = vld [vmem:[#allocation10 + $0x10] sm:$0xff] }
 0x24e   :  { %v2970_v54 = vadd.f32 %v796_v47, %v3620_v31  ;;  %v2986_v37 = vadd.f32 %v867_v50, %v3624_v46  ;;  %v1152_v38 = vld [vmem:[#allocation10 + $0x30] sm:$0xff]  ;;  %v1155_v47 = vld [vmem:[#allocation10 + $0x48] sm:$0xff] }
 0x24f   :  { %v2418_v33 = vmul.f32 -1.442695, %v2969_v42  ;;  %v3685_v42 = vpack.c.bf16 %v1152_v38, %v1148_v35  ;;  %v1159_v50 = vld [vmem:[#allocation10 + $0x68] sm:$0xff]  ;;  %v1418_v38 = vld [vmem:[#allocation10 + $0xf8] sm:$0xff] }
 0x250   :  { %v2419_v34 = vmul.f32 -1.442695, %v2970_v54  ;;  %v2420_v39 = vmul.f32 -1.442695, %v2986_v37  ;;  %v1157_v54 = vld [vmem:[#allocation10 + $0x58] sm:$0xff]  ;;  %v1154_v37 = vld [vmem:[#allocation10 + $0x40] sm:$0xff] }
 0x251   :  { %3059 = vpow2.f32 %v2418_v33  ;;  %v3690_v33 = vpack.c.bf16 %v1159_v50, %v1155_v47  ;;  %v1411_v47 = vld [vmem:[#allocation10 + $0xc0] sm:$0xff] }
 0x252   :  { %3061 = vpow2.f32 %v2419_v34  ;;  %v1161_v34 = vld [vmem:[#allocation10 + $0x78] sm:$0xff]  ;;  %v1415_v50 = vld [vmem:[#allocation10 + $0xe0] sm:$0xff] }
 0x253   :  { %3063 = vpow2.f32 %v2420_v39  ;;  %v1158_v39 = vld [vmem:[#allocation10 + $0x60] sm:$0xff] }
 0x254   :  { %3065 = vtanh.f32 %v2985_v41  ;;  %v3692_v41 = vpack.c.bf16 %v1161_v34, %v1157_v54  ;;  %v3760_v34 = vpack.c.bf16 %v1415_v50, %v1411_v47  ;;  %v1446_v50 = vld [vmem:[#allocation10 + $0x1d8] sm:$0xff] }
 0x25b   :  { %v3060_v43 = vpop.eup %3059 }
 0x25c   :  { %v3062_v29 = vpop.eup %3061  ;;  %v877_v44 = vadd.f32 1.0, %v3060_v43  ;;  %v3694_v43 = vpack.c.bf16 %v1158_v39, %v1154_v37  ;;  %v1413_v37 = vld [vmem:[#allocation10 + $0xd0] sm:$0xff] }
 0x25d   :  { %v883_v30 = vadd.f32 1.0, %v3062_v29  ;;  %v3064_v48 = vpop.eup %3063  ;;  %v1156_v29 = vld [vmem:[#allocation10 + $0x50] sm:$0xff] }
 0x25e   :  { %3067 = vrcp.f32 %v877_v44  ;;  %v3066_v51 = vpop.eup %3065  ;;  %v890_v61 = vadd.f32 1.0, %v3064_v48  ;;  %v1160_v44 = vld [vmem:[#allocation10 + $0x70] sm:$0xff] }
 0x25f   :  { %3069 = vrcp.f32 %v883_v30  ;;  %v3697_v30 = vpack.c.bf16 %v1160_v44, %v1156_v29  ;;  %v1417_v39 = vld [vmem:[#allocation10 + $0xf0] sm:$0xff]  ;;  %v1420_v44 = vld [vmem:[#allocation10 + $0x108] sm:$0xff] }
 0x260   :  { %3071 = vrcp.f32 %v890_v61  ;;  %v3763_v29 = vpack.c.bf16 %v1417_v39, %v1413_v37  ;;  %v1450_v37 = vld [vmem:[#allocation10 + $0x1f8] sm:$0xff]  ;;  %v1443_v39 = vld [vmem:[#allocation10 + $0x1c0] sm:$0xff] }
 0x268   :  { %v3068_v55 = vpop.eup %3067 }
 0x269   :  { %v3070_v56 = vpop.eup %3069  ;;  %v894_v59 = vmul.f32 %v3068_v55, %v3066_v51  ;;  %v1404_v55 = vld [vmem:[#allocation10 + $0x88] sm:$0xff] }
 0x26a   :  { %v893_v62 = vmul.f32 %v3070_v56, %v3633_v22  ;;  %v3072_v3 = vpop.eup %3071  ;;  %v1146_v22 = vld [vmem:[#allocation10] sm:$0xff]  ;;  %v1408_v56 = vld [vmem:[#allocation10 + $0xa8] sm:$0xff] }
 0x26b   :  { %v3682_v26 = vpack.c.bf16 %v1150_v24, %v1146_v22  ;;  %v3744_v61 = vpack.c.bf16 %v1408_v56, %v1404_v55  ;;  %v1416_v22 = vld [vmem:[#allocation10 + $0xe8] sm:$0xff]  ;;  %v1414_v24 = vld [vmem:[#allocation10 + $0xd8] sm:$0xff] }
 0x26c   :  { %v3673_v2 = vadd.f32 %v894_v59, %v893_v62  ;;  %v1406_v59 = vld [vmem:[#allocation10 + $0x98] sm:$0xff]  ;;  %v3756_v35 = vpack.c.bf16 %v1416_v22, %v1412_v21  ;;  %v3758_v54 = vpack.c.bf16 %v1418_v38, %v1414_v24  ;;  %v1441_v21 = vld [vmem:[#allocation10 + $0x1b0] sm:$0xff]  ;;  %v1444_v22 = vld [vmem:[#allocation10 + $0x1c8] sm:$0xff] }
 0x26d   :  { %v1410_v62 = vld [vmem:[#allocation10 + $0xb8] sm:$0xff]  ;;  %v1448_v24 = vld [vmem:[#allocation10 + $0x1e8] sm:$0xff]  ;;  %v3799_v38 = vpack.c.bf16 %v1441_v21, %v1437_v11 }
 0x26e   :  { %3073 = vtanh.f32 %v3673_v2  ;;  %v1438_v55 = vld [vmem:[#allocation10 + $0x198] sm:$0xff]  ;;  %v3801_v47 = vpack.c.bf16 %v1448_v24, %v1444_v22 }
 0x26f   :  { %v1442_v56 = vld [vmem:[#allocation10 + $0x1b8] sm:$0xff] }
 0x278   :  { %v3074_v6 = vpop.eup %3073 }
 0x279   :  { %v897_v8 = vmul.f32 %v3074_v6, %v3072_v3  ;;  %v1407_v3 = vld [vmem:[#allocation10 + $0xa0] sm:$0xff]  ;;  %v3746_v6 = vpack.c.bf16 %v1410_v62, %v1406_v59  ;;  %v3792_v62 = vpack.c.bf16 %v1442_v56, %v1438_v55 }
 0x27b   :  { %899 = vst [vmem:[#allocation13 + $0x8] sm:$0xff] %v897_v8  ;;  %1034 = vmatmul.mubr.f32.vlgmr.msra.gmra.mrb[4].mxu0 %v897_v8  ;;  %1105 = vmatmul.mubr.f32.vlgmr.msra.gmra.mrb[4].mxu1 %v897_v8 }
 0x27c   :  { %1274 = vmatprep.mubr.f32.mxu0 %v3343_v0  ;;  %1345 = vmatprep.mubr.f32.mxu1 %v3343_v0 }
 0x27d   :  { %2650 = vmatpush1.bf16.msra.mxu0 %v3682_v26  ;;  %2682 = vmatpush1.bf16.msra.mxu1 %v3685_v42 }
 0x27e   :  { %2652 = vmatprep.subr.bf16.mxu0 %v3690_v33  ;;  %2684 = vmatprep.subr.bf16.mxu1 %v3692_v41 }
 0x281   :  { %2654 = vmatpush1.bf16.msra.mxu0 %v3694_v43  ;;  %2686 = vmatpush1.bf16.msra.mxu1 %v3697_v30 }
 0x282   :  { %2656 = vmatprep.subr.bf16.mxu0 %v3476_v57  ;;  %2688 = vmatprep.subr.bf16.mxu1 %v3480_v60 }
 0x285   :  { %2658 = vmatpush1.bf16.msra.mxu0 %v3484_v1  ;;  %2690 = vmatpush1.bf16.msra.mxu1 %v3488_v4 }
 0x286   :  { %2660 = vmatprep.subr.bf16.mxu0 %v3492_v7  ;;  %2692 = vmatprep.subr.bf16.mxu1 %v3496_v10 }
 0x289   :  { %2662 = vmatpush1.bf16.msra.mxu0 %v3500_v14  ;;  %2694 = vmatpush1.bf16.msra.mxu1 %v3504_v17 }
 0x28a   :  { %2664 = vmatprep.subr.bf16.mxu0 %v3508_v20  ;;  %2696 = vmatprep.subr.bf16.mxu1 %v3512_v23 }
 0x28d   :  { %2666 = vmatpush1.bf16.msra.mxu0 %v3516_v27  ;;  %2698 = vmatpush1.bf16.msra.mxu1 %v3520_v32 }
 0x28e   :  { %2668 = vmatprep.subr.bf16.mxu0 %v3524_v36  ;;  %2700 = vmatprep.subr.bf16.mxu1 %v3528_v40 }
 0x291   :  { %2670 = vmatpush1.bf16.msra.mxu0 %v3532_v45  ;;  %2702 = vmatpush1.bf16.msra.mxu1 %v3536_v49 }
 0x292   :  { %2672 = vmatprep.subr.bf16.mxu0 %v3540_v53  ;;  %2704 = vmatprep.subr.bf16.mxu1 %v3544_v58 }
 0x295   :  { %2674 = vmatpush1.bf16.msra.mxu0 %v3548_v63  ;;  %2706 = vmatpush1.bf16.msra.mxu1 %v3552_v5 }
 0x296   :  { %2676 = vmatprep.subr.bf16.mxu0 %v3556_v9  ;;  %2708 = vmatprep.subr.bf16.mxu1 %v3560_v13 }
 0x299   :  { %2678 = vmatpush1.bf16.msra.mxu0 %v3564_v16  ;;  %2710 = vmatpush1.bf16.msra.mxu1 %v3568_v18 }
 0x29a   :  { %2712 = vmatprep.subr.bf16.mxu0 %v3678_v19  ;;  %2744 = vmatprep.subr.bf16.mxu1 %v3680_v25 }
 0x34e   :  { %v1035_v57 = vpop.f32.mrb[4].mxu0  ;;  %v1106_v60 = vpop.f32.mrb[4].mxu1 }
 0x34f   :  { %v2971_v1 = vadd.f32 %v1035_v57, %v3618_v28  ;;  %v1037_v4 = vpop.f32.mrb[5].mxu0  ;;  %v1108_v7 = vpop.f32.mrb[5].mxu1  ;;  %v2987_v27 = vadd.f32 %v1106_v60, %v3627_v52  ;;  %v1424_v57 = vld [vmem:[#allocation10 + $0x128] sm:$0xff]  ;;  %v1422_v60 = vld [vmem:[#allocation10 + $0x118] sm:$0xff] }
 0x350   :  { %v2972_v10 = vadd.f32 %v1037_v4, %v3620_v31  ;;  %v2988_v20 = vadd.f32 %v1108_v7, %v3624_v46  ;;  %v1426_v4 = vld [vmem:[#allocation10 + $0x138] sm:$0xff]  ;;  %v1419_v7 = vld [vmem:[#allocation10 + $0x100] sm:$0xff] }
 0x351   :  { %v2421_v14 = vmul.f32 -1.442695, %v2971_v1  ;;  %v3768_v1 = vpack.c.bf16 %v1424_v57, %v1420_v44  ;;  %v3804_v44 = vpack.c.bf16 %v1450_v37, %v1446_v50  ;;  %v1447_v57 = vld [vmem:[#allocation10 + $0x1e0] sm:$0xff] }
 0x352   :  { %v2422_v17 = vmul.f32 -1.442695, %v2972_v10  ;;  %v2423_v23 = vmul.f32 -1.442695, %v2988_v20  ;;  %v1423_v10 = vld [vmem:[#allocation10 + $0x120] sm:$0xff]  ;;  %v1421_v20 = vld [vmem:[#allocation10 + $0x110] sm:$0xff] }
 0x353   :  { %3075 = vpow2.f32 %v2421_v14  ;;  %v3770_v14 = vpack.c.bf16 %v1426_v4, %v1422_v60  ;;  %v1445_v60 = vld [vmem:[#allocation10 + $0x1d0] sm:$0xff] }
 0x354   :  { %3077 = vpow2.f32 %v2422_v17  ;;  %v3772_v17 = vpack.c.bf16 %v1423_v10, %v1419_v7  ;;  %v1449_v4 = vld [vmem:[#allocation10 + $0x1f0] sm:$0xff]  ;;  %v3807_v7 = vpack.c.bf16 %v1447_v57, %v1443_v39 }
 0x355   :  { %3079 = vpow2.f32 %v2423_v23  ;;  %v1425_v23 = vld [vmem:[#allocation10 + $0x130] sm:$0xff]  ;;  %v3811_v10 = vpack.c.bf16 %v1449_v4, %v1445_v60 }
 0x356   :  { %3081 = vtanh.f32 %v2987_v27  ;;  %v3775_v27 = vpack.c.bf16 %v1425_v23, %v1421_v20 }
 0x35d   :  { %v3076_v32 = vpop.eup %3075 }
 0x35e   :  { %v3078_v36 = vpop.eup %3077  ;;  %v1118_v40 = vadd.f32 1.0, %v3076_v32  ;;  %v1428_v32 = vld [vmem:[#allocation10 + $0x148] sm:$0xff] }
 0x35f   :  { %v1124_v45 = vadd.f32 1.0, %v3078_v36  ;;  %v3080_v49 = vpop.eup %3079  ;;  %v1432_v36 = vld [vmem:[#allocation10 + $0x168] sm:$0xff] }
 0x360   :  { %3083 = vrcp.f32 %v1118_v40  ;;  %v3082_v53 = vpop.eup %3081  ;;  %v1131_v9 = vadd.f32 1.0, %v3080_v49  ;;  %v1430_v40 = vld [vmem:[#allocation10 + $0x158] sm:$0xff] }
 0x361   :  { %3085 = vrcp.f32 %v1124_v45  ;;  %v3779_v45 = vpack.c.bf16 %v1432_v36, %v1428_v32  ;;  %v1434_v49 = vld [vmem:[#allocation10 + $0x178] sm:$0xff] }
 0x362   :  { %3087 = vrcp.f32 %v1131_v9  ;;  %v1429_v9 = vld [vmem:[#allocation10 + $0x150] sm:$0xff] }
 0x36a   :  { %v3084_v58 = vpop.eup %3083 }
 0x36b   :  { %v3086_v63 = vpop.eup %3085  ;;  %v1135_v5 = vmul.f32 %v3084_v58, %v3082_v53  ;;  %v1427_v53 = vld [vmem:[#allocation10 + $0x140] sm:$0xff] }
 0x36c   :  { %v1134_v13 = vmul.f32 %v3086_v63, %v3673_v2  ;;  %v3088_v18 = vpop.eup %3087  ;;  %v1403_v2 = vld [vmem:[#allocation10 + $0x80] sm:$0xff]  ;;  %v3782_v63 = vpack.c.bf16 %v1434_v49, %v1430_v40 }
 0x36d   :  { %v3748_v8 = vpack.c.bf16 %v1407_v3, %v1403_v2  ;;  %v1431_v58 = vld [vmem:[#allocation10 + $0x160] sm:$0xff] }
 0x36e   :  { %v3733_v16 = vadd.f32 %v1135_v5, %v1134_v13  ;;  %v3784_v5 = vpack.c.bf16 %v1431_v58, %v1427_v53  ;;  %v1433_v13 = vld [vmem:[#allocation10 + $0x170] sm:$0xff]  ;;  %v1435_v2 = vld [vmem:[#allocation10 + $0x180] sm:$0xff] }
 0x36f   :  { %v1439_v3 = vld [vmem:[#allocation10 + $0x1a0] sm:$0xff] }
 0x370   :  { %3089 = vtanh.f32 %v3733_v16  ;;  %v3795_v12 = vpack.c.bf16 %v1439_v3, %v1435_v2 }
 0x37a   :  { %v3090_v48 = vpop.eup %3089 }
 0x37b   :  { %v1138_v51 = vmul.f32 %v3090_v48, %v3088_v18  ;;  %v1436_v18 = vld [vmem:[#allocation10 + $0x188] sm:$0xff]  ;;  %v3787_v48 = vpack.c.bf16 %v1433_v13, %v1429_v9 }
 0x37d   :  { %1140 = vst [vmem:[#allocation13 + $0x10] sm:$0xff] %v1138_v51  ;;  %1275 = vmatmul.mubr.f32.vlgmr.msra.gmra.mrb[6].mxu0 %v1138_v51  ;;  %1346 = vmatmul.mubr.f32.vlgmr.msra.gmra.mrb[6].mxu1 %v1138_v51  ;;  %v1440_v51 = vld [vmem:[#allocation10 + $0x1a8] sm:$0xff] }
 0x37e   :  { %2714 = vmatpush1.bf16.msra.mxu0 %v3682_v26  ;;  %2746 = vmatpush1.bf16.msra.mxu1 %v3685_v42  ;;  %v3790_v59 = vpack.c.bf16 %v1440_v51, %v1436_v18 }
 0x37f   :  { %2716 = vmatprep.subr.bf16.mxu0 %v3690_v33  ;;  %2748 = vmatprep.subr.bf16.mxu1 %v3692_v41 }
 0x380   :  { %1515 = vmatprep.mubr.f32.mxu0 %v3343_v0  ;;  %1586 = vmatprep.mubr.f32.mxu1 %v3343_v0 }
 0x382   :  { %2718 = vmatpush1.bf16.msra.mxu0 %v3694_v43  ;;  %2750 = vmatpush1.bf16.msra.mxu1 %v3697_v30 }
 0x383   :  { %2720 = vmatprep.subr.bf16.mxu0 %v3744_v61  ;;  %2752 = vmatprep.subr.bf16.mxu1 %v3746_v6 }
 0x386   :  { %2722 = vmatpush1.bf16.msra.mxu0 %v3748_v8  ;;  %2754 = vmatpush1.bf16.msra.mxu1 %v3751_v15 }
 0x387   :  { %2724 = vmatprep.subr.bf16.mxu0 %v3756_v35  ;;  %2756 = vmatprep.subr.bf16.mxu1 %v3758_v54 }
 0x38a   :  { %2726 = vmatpush1.bf16.msra.mxu0 %v3760_v34  ;;  %2758 = vmatpush1.bf16.msra.mxu1 %v3763_v29 }
 0x38b   :  { %2728 = vmatprep.subr.bf16.mxu0 %v3768_v1  ;;  %2760 = vmatprep.subr.bf16.mxu1 %v3770_v14 }
 0x38e   :  { %2730 = vmatpush1.bf16.msra.mxu0 %v3772_v17  ;;  %2762 = vmatpush1.bf16.msra.mxu1 %v3775_v27 }
 0x38f   :  { %2732 = vmatprep.subr.bf16.mxu0 %v3779_v45  ;;  %2764 = vmatprep.subr.bf16.mxu1 %v3782_v63 }
 0x392   :  { %2734 = vmatpush1.bf16.msra.mxu0 %v3784_v5  ;;  %2766 = vmatpush1.bf16.msra.mxu1 %v3787_v48 }
 0x393   :  { %2736 = vmatprep.subr.bf16.mxu0 %v3790_v59  ;;  %2768 = vmatprep.subr.bf16.mxu1 %v3792_v62 }
 0x396   :  { %2738 = vmatpush1.bf16.msra.mxu0 %v3795_v12  ;;  %2770 = vmatpush1.bf16.msra.mxu1 %v3799_v38 }
 0x397   :  { %2740 = vmatprep.subr.bf16.mxu0 %v3801_v47  ;;  %2772 = vmatprep.subr.bf16.mxu1 %v3804_v44 }
 0x39a   :  { %2742 = vmatpush1.bf16.msra.mxu0 %v3807_v7  ;;  %2774 = vmatpush1.bf16.msra.mxu1 %v3811_v10 }
 0x39b   :  { %2776 = vmatprep.subr.bf16.mxu0 %v3678_v19  ;;  %2808 = vmatprep.subr.bf16.mxu1 %v3680_v25 }
 0x450   :  { %v1276_v20 = vpop.f32.mrb[6].mxu0  ;;  %v1347_v23 = vpop.f32.mrb[6].mxu1 }
 0x451   :  { %v2973_v32 = vadd.f32 %v1276_v20, %v3618_v28  ;;  %v1278_v36 = vpop.f32.mrb[7].mxu0  ;;  %v1349_v40 = vpop.f32.mrb[7].mxu1  ;;  %v2989_v18 = vadd.f32 %v1347_v23, %v3627_v52 }
 0x452   :  { %v2974_v49 = vadd.f32 %v1278_v36, %v3620_v31  ;;  %v2990_v9 = vadd.f32 %v1349_v40, %v3624_v46 }
 0x453   :  { %v2424_v53 = vmul.f32 -1.442695, %v2973_v32 }
 0x454   :  { %v2425_v58 = vmul.f32 -1.442695, %v2974_v49  ;;  %v2426_v13 = vmul.f32 -1.442695, %v2990_v9 }
 0x455   :  { %3091 = vpow2.f32 %v2424_v53 }
 0x456   :  { %3093 = vpow2.f32 %v2425_v58 }
 0x457   :  { %3095 = vpow2.f32 %v2426_v13 }
 0x458   :  { %3097 = vtanh.f32 %v2989_v18 }
 0x45f   :  { %v3092_v51 = vpop.eup %3091 }
 0x460   :  { %v3094_v55 = vpop.eup %3093  ;;  %v1359_v56 = vadd.f32 1.0, %v3092_v51 }
 0x461   :  { %v1365_v2 = vadd.f32 1.0, %v3094_v55  ;;  %v3096_v3 = vpop.eup %3095 }
 0x462   :  { %3099 = vrcp.f32 %v1359_v56  ;;  %v3098_v11 = vpop.eup %3097  ;;  %v1372_v50 = vadd.f32 1.0, %v3096_v3 }
 0x463   :  { %3101 = vrcp.f32 %v1365_v2 }
 0x464   :  { %3103 = vrcp.f32 %v1372_v50 }
 0x46c   :  { %v3100_v21 = vpop.eup %3099 }
 0x46d   :  { %v3102_v22 = vpop.eup %3101  ;;  %v1376_v24 = vmul.f32 %v3100_v21, %v3098_v11 }
 0x46e   :  { %v1375_v37 = vmul.f32 %v3102_v22, %v3733_v16  ;;  %v3104_v57 = vpop.eup %3103 }
 0x470   :  { %v3823_v39 = vadd.f32 %v1376_v24, %v1375_v37 }
 0x472   :  { %3105 = vtanh.f32 %v3823_v39 }
 0x47c   :  { %v3106_v60 = vpop.eup %3105 }
 0x47d   :  { %v1379_v4 = vmul.f32 %v3106_v60, %v3104_v57 }
 0x47f   :  { %1381 = vst [vmem:[#allocation13 + $0x18] sm:$0xff] %v1379_v4  ;;  %1516 = vmatmul.mubr.f32.vlgmr.msra.gmra.mrb[8].mxu0 %v1379_v4  ;;  %1587 = vmatmul.mubr.f32.vlgmr.msra.gmra.mrb[8].mxu1 %v1379_v4 }
 0x480   :  { %2778 = vmatpush1.bf16.msra.mxu0 %v3682_v26  ;;  %2810 = vmatpush1.bf16.msra.mxu1 %v3685_v42 }
 0x481   :  { %2780 = vmatprep.subr.bf16.mxu0 %v3690_v33  ;;  %2812 = vmatprep.subr.bf16.mxu1 %v3692_v41 }
 0x482   :  { %1756 = vmatprep.mubr.f32.mxu0 %v3343_v0  ;;  %1827 = vmatprep.mubr.f32.mxu1 %v3343_v0 }
 0x484   :  { %2782 = vmatpush1.bf16.msra.mxu0 %v3694_v43  ;;  %2814 = vmatpush1.bf16.msra.mxu1 %v3697_v30 }
 0x485   :  { %2784 = vmatprep.subr.bf16.mxu0 %v3744_v61  ;;  %2816 = vmatprep.subr.bf16.mxu1 %v3746_v6 }
 0x488   :  { %2786 = vmatpush1.bf16.msra.mxu0 %v3748_v8  ;;  %2818 = vmatpush1.bf16.msra.mxu1 %v3751_v15 }
 0x489   :  { %2788 = vmatprep.subr.bf16.mxu0 %v3756_v35  ;;  %2820 = vmatprep.subr.bf16.mxu1 %v3758_v54 }
 0x48c   :  { %2790 = vmatpush1.bf16.msra.mxu0 %v3760_v34  ;;  %2822 = vmatpush1.bf16.msra.mxu1 %v3763_v29 }
 0x48d   :  { %2792 = vmatprep.subr.bf16.mxu0 %v3768_v1  ;;  %2824 = vmatprep.subr.bf16.mxu1 %v3770_v14 }
 0x490   :  { %2794 = vmatpush1.bf16.msra.mxu0 %v3772_v17  ;;  %2826 = vmatpush1.bf16.msra.mxu1 %v3775_v27 }
 0x491   :  { %2796 = vmatprep.subr.bf16.mxu0 %v3779_v45  ;;  %2828 = vmatprep.subr.bf16.mxu1 %v3782_v63 }
 0x494   :  { %2798 = vmatpush1.bf16.msra.mxu0 %v3784_v5  ;;  %2830 = vmatpush1.bf16.msra.mxu1 %v3787_v48 }
 0x495   :  { %2800 = vmatprep.subr.bf16.mxu0 %v3790_v59  ;;  %2832 = vmatprep.subr.bf16.mxu1 %v3792_v62 }
 0x498   :  { %2802 = vmatpush1.bf16.msra.mxu0 %v3795_v12  ;;  %2834 = vmatpush1.bf16.msra.mxu1 %v3799_v38 }
 0x499   :  { %2804 = vmatprep.subr.bf16.mxu0 %v3801_v47  ;;  %2836 = vmatprep.subr.bf16.mxu1 %v3804_v44 }
 0x49c   :  { %2806 = vmatpush1.bf16.msra.mxu0 %v3807_v7  ;;  %2838 = vmatpush1.bf16.msra.mxu1 %v3811_v10 }
 0x49d   :  { %2840 = vmatprep.subr.bf16.mxu0 %v3678_v19  ;;  %2872 = vmatprep.subr.bf16.mxu1 %v3680_v25 }
 0x552   :  { %v1517_v16 = vpop.f32.mrb[8].mxu0  ;;  %v1588_v20 = vpop.f32.mrb[8].mxu1 }
 0x553   :  { %v2975_v23 = vadd.f32 %v1517_v16, %v3618_v28  ;;  %v1519_v32 = vpop.f32.mrb[9].mxu0  ;;  %v1590_v36 = vpop.f32.mrb[9].mxu1  ;;  %v2991_v13 = vadd.f32 %v1588_v20, %v3627_v52 }
 0x554   :  { %v2976_v40 = vadd.f32 %v1519_v32, %v3620_v31  ;;  %v2992_v58 = vadd.f32 %v1590_v36, %v3624_v46 }
 0x555   :  { %v2427_v49 = vmul.f32 -1.442695, %v2975_v23 }
 0x556   :  { %v2428_v53 = vmul.f32 -1.442695, %v2976_v40  ;;  %v2429_v9 = vmul.f32 -1.442695, %v2992_v58 }
 0x557   :  { %3107 = vpow2.f32 %v2427_v49 }
 0x558   :  { %3109 = vpow2.f32 %v2428_v53 }
 0x559   :  { %3111 = vpow2.f32 %v2429_v9 }
 0x55a   :  { %3113 = vtanh.f32 %v2991_v13 }
 0x561   :  { %v3108_v19 = vpop.eup %3107 }
 0x562   :  { %v3110_v18 = vpop.eup %3109  ;;  %v1600_v25 = vadd.f32 1.0, %v3108_v19 }
 0x563   :  { %v1606_v51 = vadd.f32 1.0, %v3110_v18  ;;  %v3112_v55 = vpop.eup %3111 }
 0x564   :  { %3115 = vrcp.f32 %v1600_v25  ;;  %v3114_v56 = vpop.eup %3113  ;;  %v1613_v21 = vadd.f32 1.0, %v3112_v55 }
 0x565   :  { %3117 = vrcp.f32 %v1606_v51 }
 0x566   :  { %3119 = vrcp.f32 %v1613_v21 }
 0x56e   :  { %v3116_v2 = vpop.eup %3115 }
 0x56f   :  { %v3118_v3 = vpop.eup %3117  ;;  %v1617_v11 = vmul.f32 %v3116_v2, %v3114_v56  ;;  %v2111_v2 = vld [vmem:[#allocation10 + $0x8] sm:$0xff] }
 0x570   :  { %v1616_v22 = vmul.f32 %v3118_v3, %v3823_v39  ;;  %v3120_v50 = vpop.eup %3119  ;;  %v2115_v3 = vld [vmem:[#allocation10 + $0x28] sm:$0xff] }
 0x571   :  { %v2903_v21 = vpack.c.bf16 %v2115_v3, %v2111_v2 }
 0x572   :  { %v3865_v24 = vadd.f32 %v1617_v11, %v1616_v22  ;;  %v2113_v11 = vld [vmem:[#allocation10 + $0x18] sm:$0xff] }
 0x573   :  { %v2117_v22 = vld [vmem:[#allocation10 + $0x38] sm:$0xff] }
 0x574   :  { %3121 = vtanh.f32 %v3865_v24 }
 0x57e   :  { %v3122_v37 = vpop.eup %3121 }
 0x57f   :  { %v1620_v57 = vmul.f32 %v3122_v37, %v3120_v50  ;;  %v2114_v50 = vld [vmem:[#allocation10 + $0x20] sm:$0xff]  ;;  %v2935_v37 = vpack.c.bf16 %v2117_v22, %v2113_v11 }
 0x581   :  { %1622 = vst [vmem:[#allocation13 + $0x20] sm:$0xff] %v1620_v57  ;;  %1757 = vmatmul.mubr.f32.vlgmr.msra.gmra.mrb[10].mxu0 %v1620_v57  ;;  %1828 = vmatmul.mubr.f32.vlgmr.msra.gmra.mrb[10].mxu1 %v1620_v57 }
 0x582   :  { %2842 = vmatpush1.bf16.msra.mxu0 %v3682_v26  ;;  %2874 = vmatpush1.bf16.msra.mxu1 %v3685_v42 }
 0x583   :  { %2844 = vmatprep.subr.bf16.mxu0 %v3690_v33  ;;  %2876 = vmatprep.subr.bf16.mxu1 %v3692_v41 }
 0x584   :  { %1997 = vmatprep.mubr.f32.mxu0 %v3343_v0  ;;  %2068 = vmatprep.mubr.f32.mxu1 %v3343_v0 }
 0x586   :  { %2846 = vmatpush1.bf16.msra.mxu0 %v3694_v43  ;;  %2878 = vmatpush1.bf16.msra.mxu1 %v3697_v30 }
 0x587   :  { %2848 = vmatprep.subr.bf16.mxu0 %v3744_v61  ;;  %2880 = vmatprep.subr.bf16.mxu1 %v3746_v6 }
 0x58a   :  { %2850 = vmatpush1.bf16.msra.mxu0 %v3748_v8  ;;  %2882 = vmatpush1.bf16.msra.mxu1 %v3751_v15 }
 0x58b   :  { %2852 = vmatprep.subr.bf16.mxu0 %v3756_v35  ;;  %2884 = vmatprep.subr.bf16.mxu1 %v3758_v54 }
 0x58e   :  { %2854 = vmatpush1.bf16.msra.mxu0 %v3760_v34  ;;  %2886 = vmatpush1.bf16.msra.mxu1 %v3763_v29 }
 0x58f   :  { %2856 = vmatprep.subr.bf16.mxu0 %v3768_v1  ;;  %2888 = vmatprep.subr.bf16.mxu1 %v3770_v14 }
 0x592   :  { %2858 = vmatpush1.bf16.msra.mxu0 %v3772_v17  ;;  %2890 = vmatpush1.bf16.msra.mxu1 %v3775_v27 }
 0x593   :  { %2860 = vmatprep.subr.bf16.mxu0 %v3779_v45  ;;  %2892 = vmatprep.subr.bf16.mxu1 %v3782_v63 }
 0x596   :  { %2862 = vmatpush1.bf16.msra.mxu0 %v3784_v5  ;;  %2894 = vmatpush1.bf16.msra.mxu1 %v3787_v48 }
 0x597   :  { %2864 = vmatprep.subr.bf16.mxu0 %v3790_v59  ;;  %2896 = vmatprep.subr.bf16.mxu1 %v3792_v62 }
 0x59a   :  { %2866 = vmatpush1.bf16.msra.mxu0 %v3795_v12  ;;  %2898 = vmatpush1.bf16.msra.mxu1 %v3799_v38 }
 0x59b   :  { %2868 = vmatprep.subr.bf16.mxu0 %v3801_v47  ;;  %2900 = vmatprep.subr.bf16.mxu1 %v3804_v44 }
 0x59e   :  { %2870 = vmatpush1.bf16.msra.mxu0 %v3807_v7  ;;  %2902 = vmatpush1.bf16.msra.mxu1 %v3811_v10 }
 0x59f   :  { %2904 = vmatprep.subr.bf16.mxu0 %v2903_v21  ;;  %2936 = vmatprep.subr.bf16.mxu1 %v2935_v37 }
 0x654   :  { %v1758_v26 = vpop.f32.mrb[10].mxu0  ;;  %v1829_v42 = vpop.f32.mrb[10].mxu1 }
 0x655   :  { %v2977_v33 = vadd.f32 %v1758_v26, %v3618_v28  ;;  %v1760_v41 = vpop.f32.mrb[11].mxu0  ;;  %v1831_v43 = vpop.f32.mrb[11].mxu1  ;;  %v2993_v20 = vadd.f32 %v1829_v42, %v3627_v52  ;;  %v2112_v26 = vld [vmem:[#allocation10 + $0x10] sm:$0xff] }
 0x656   :  { %v2978_v30 = vadd.f32 %v1760_v41, %v3620_v31  ;;  %v2994_v4 = vadd.f32 %v1831_v43, %v3624_v46  ;;  %v2116_v42 = vld [vmem:[#allocation10 + $0x30] sm:$0xff]  ;;  %v2119_v41 = vld [vmem:[#allocation10 + $0x48] sm:$0xff] }
 0x657   :  { %v2430_v39 = vmul.f32 -1.442695, %v2977_v33  ;;  %v2937_v33 = vpack.c.bf16 %v2116_v42, %v2112_v26  ;;  %v2123_v43 = vld [vmem:[#allocation10 + $0x68] sm:$0xff] }
 0x658   :  { %v2431_v60 = vmul.f32 -1.442695, %v2978_v30  ;;  %v2432_v16 = vmul.f32 -1.442695, %v2994_v4  ;;  %v2121_v30 = vld [vmem:[#allocation10 + $0x58] sm:$0xff]  ;;  %v2122_v4 = vld [vmem:[#allocation10 + $0x60] sm:$0xff] }
 0x659   :  { %3123 = vpow2.f32 %v2430_v39  ;;  %v2125_v39 = vld [vmem:[#allocation10 + $0x78] sm:$0xff] }
 0x65a   :  { %3125 = vpow2.f32 %v2431_v60  ;;  %v2118_v60 = vld [vmem:[#allocation10 + $0x40] sm:$0xff] }
 0x65b   :  { %3127 = vpow2.f32 %v2432_v16  ;;  %v2939_v16 = vpack.c.bf16 %v2125_v39, %v2121_v30 }
 0x65c   :  { %3129 = vtanh.f32 %v2993_v20  ;;  %v2909_v20 = vpack.c.bf16 %v2122_v4, %v2118_v60 }
 0x663   :  { %v3124_v23 = vpop.eup %3123 }
 0x664   :  { %v3126_v32 = vpop.eup %3125  ;;  %v1841_v36 = vadd.f32 1.0, %v3124_v23  ;;  %v2120_v23 = vld [vmem:[#allocation10 + $0x50] sm:$0xff] }
 0x665   :  { %v1847_v40 = vadd.f32 1.0, %v3126_v32  ;;  %v3128_v49 = vpop.eup %3127  ;;  %v2124_v32 = vld [vmem:[#allocation10 + $0x70] sm:$0xff] }
 0x666   :  { %3131 = vrcp.f32 %v1841_v36  ;;  %v3130_v53 = vpop.eup %3129  ;;  %v1854_v19 = vadd.f32 1.0, %v3128_v49  ;;  %v2941_v36 = vpack.c.bf16 %v2124_v32, %v2120_v23 }
 0x667   :  { %3133 = vrcp.f32 %v1847_v40 }
 0x668   :  { %3135 = vrcp.f32 %v1854_v19 }
 0x670   :  { %v3132_v58 = vpop.eup %3131 }
 0x671   :  { %v3134_v9 = vpop.eup %3133  ;;  %v1858_v13 = vmul.f32 %v3132_v58, %v3130_v53 }
 0x672   :  { %v1857_v18 = vmul.f32 %v3134_v9, %v3865_v24  ;;  %v3136_v51 = vpop.eup %3135  ;;  %v2110_v24 = vld [vmem:[#allocation10] sm:$0xff] }
 0x673   :  { %v2905_v57 = vpack.c.bf16 %v2114_v50, %v2110_v24 }
 0x674   :  { %v3905_v25 = vadd.f32 %v1858_v13, %v1857_v18 }
 0x676   :  { %3137 = vtanh.f32 %v3905_v25 }
 0x680   :  { %v3138_v55 = vpop.eup %3137 }
 0x681   :  { %v1861_v56 = vmul.f32 %v3138_v55, %v3136_v51 }
 0x683   :  { %1863 = vst [vmem:[#allocation13 + $0x28] sm:$0xff] %v1861_v56  ;;  %1998 = vmatmul.mubr.f32.vlgmr.msra.gmra.mrb[12].mxu0 %v1861_v56  ;;  %2069 = vmatmul.mubr.f32.vlgmr.msra.gmra.mrb[12].mxu1 %v1861_v56 }
 0x684   :  { %2238 = vmatprep.mubr.f32.mxu0 %v3343_v0  ;;  %2309 = vmatprep.mubr.f32.mxu1 %v3343_v0  ;;  %v2907_v0 = vpack.c.bf16 %v2123_v43, %v2119_v41 }
 0x685   :  { %2906 = vmatpush1.bf16.msra.mxu0 %v2905_v57  ;;  %2938 = vmatpush1.bf16.msra.mxu1 %v2937_v33 }
 0x686   :  { %2908 = vmatprep.subr.bf16.mxu0 %v2907_v0  ;;  %2940 = vmatprep.subr.bf16.mxu1 %v2939_v16 }
 0x689   :  { %2910 = vmatpush1.bf16.msra.mxu0 %v2909_v20  ;;  %2942 = vmatpush1.bf16.msra.mxu1 %v2941_v36 }
 0x68a   :  { %2912 = vmatprep.subr.bf16.mxu0 %v3744_v61  ;;  %2944 = vmatprep.subr.bf16.mxu1 %v3746_v6 }
 0x68d   :  { %2914 = vmatpush1.bf16.msra.mxu0 %v3748_v8  ;;  %2946 = vmatpush1.bf16.msra.mxu1 %v3751_v15 }
 0x68e   :  { %2916 = vmatprep.subr.bf16.mxu0 %v3756_v35  ;;  %2948 = vmatprep.subr.bf16.mxu1 %v3758_v54 }
 0x691   :  { %2918 = vmatpush1.bf16.msra.mxu0 %v3760_v34  ;;  %2950 = vmatpush1.bf16.msra.mxu1 %v3763_v29 }
 0x692   :  { %2920 = vmatprep.subr.bf16.mxu0 %v3768_v1  ;;  %2952 = vmatprep.subr.bf16.mxu1 %v3770_v14 }
 0x695   :  { %2922 = vmatpush1.bf16.msra.mxu0 %v3772_v17  ;;  %2954 = vmatpush1.bf16.msra.mxu1 %v3775_v27 }
 0x696   :  { %2924 = vmatprep.subr.bf16.mxu0 %v3779_v45  ;;  %2956 = vmatprep.subr.bf16.mxu1 %v3782_v63 }
 0x699   :  { %2926 = vmatpush1.bf16.msra.mxu0 %v3784_v5  ;;  %2958 = vmatpush1.bf16.msra.mxu1 %v3787_v48 }
 0x69a   :  { %2928 = vmatprep.subr.bf16.mxu0 %v3790_v59  ;;  %2960 = vmatprep.subr.bf16.mxu1 %v3792_v62 }
 0x69d   :  { %2930 = vmatpush1.bf16.msra.mxu0 %v3795_v12  ;;  %2962 = vmatpush1.bf16.msra.mxu1 %v3799_v38 }
 0x69e   :  { %2932 = vmatprep.subr.bf16.mxu0 %v3801_v47  ;;  %2964 = vmatprep.subr.bf16.mxu1 %v3804_v44 }
 0x6a1   :  { %2934 = vmatpush1.bf16.msra.mxu0 %v3807_v7  ;;  %2966 = vmatpush1.bf16.msra.mxu1 %v3811_v10 }
 0x756   :  { %v1999_v61 = vpop.f32.mrb[12].mxu0  ;;  %v2070_v6 = vpop.f32.mrb[12].mxu1 }
 0x757   :  { %v2979_v8 = vadd.f32 %v1999_v61, %v3618_v28  ;;  %v2001_v15 = vpop.f32.mrb[13].mxu0  ;;  %v2072_v35 = vpop.f32.mrb[13].mxu1  ;;  %v2995_v17 = vadd.f32 %v2070_v6, %v3627_v52 }
 0x758   :  { %v2980_v54 = vadd.f32 %v2001_v15, %v3620_v31  ;;  %v2996_v1 = vadd.f32 %v2072_v35, %v3624_v46 }
 0x759   :  { %v2433_v34 = vmul.f32 -1.442695, %v2979_v8 }
 0x75a   :  { %v2434_v29 = vmul.f32 -1.442695, %v2980_v54  ;;  %v2435_v14 = vmul.f32 -1.442695, %v2996_v1 }
 0x75b   :  { %3139 = vpow2.f32 %v2433_v34 }
 0x75c   :  { %3141 = vpow2.f32 %v2434_v29 }
 0x75d   :  { %3143 = vpow2.f32 %v2435_v14 }
 0x75e   :  { %3145 = vtanh.f32 %v2995_v17 }
 0x765   :  { %v3140_v27 = vpop.eup %3139 }
 0x766   :  { %v3142_v45 = vpop.eup %3141  ;;  %v2082_v63 = vadd.f32 1.0, %v3140_v27 }
 0x767   :  { %v2088_v5 = vadd.f32 1.0, %v3142_v45  ;;  %v3144_v48 = vpop.eup %3143 }
 0x768   :  { %3147 = vrcp.f32 %v2082_v63  ;;  %v3146_v59 = vpop.eup %3145  ;;  %v2095_v47 = vadd.f32 1.0, %v3144_v48 }
 0x769   :  { %3149 = vrcp.f32 %v2088_v5 }
 0x76a   :  { %3151 = vrcp.f32 %v2095_v47 }
 0x772   :  { %v3148_v62 = vpop.eup %3147 }
 0x773   :  { %v3150_v12 = vpop.eup %3149  ;;  %v2099_v38 = vmul.f32 %v3148_v62, %v3146_v59 }
 0x774   :  { %v2098_v44 = vmul.f32 %v3150_v12, %v3905_v25  ;;  %v3152_v10 = vpop.eup %3151 }
 0x776   :  { %v2100_v7 = vadd.f32 %v2099_v38, %v2098_v44 }
 0x778   :  { %3153 = vtanh.f32 %v2100_v7 }
 0x782   :  { %v3154_v40 = vpop.eup %3153 }
 0x783   :  { %v2102_v49 = vmul.f32 %v3154_v40, %v3152_v10 }
 0x785   :  { %2104 = vst [vmem:[#allocation13 + $0x30] sm:$0xff] %v2102_v49  ;;  %2239 = vmatmul.mubr.f32.vlgmr.msra.gmra.mrb[14].mxu0 %v2102_v49  ;;  %2310 = vmatmul.mubr.f32.vlgmr.msra.gmra.mrb[14].mxu1 %v2102_v49 }
 0x858   :  { %v2240_v53 = vpop.f32.mrb[14].mxu0  ;;  %v2311_v58 = vpop.f32.mrb[14].mxu1 }
 0x859   :  { %v2981_v9 = vadd.f32 %v2240_v53, %v3618_v28  ;;  %v2242_v13 = vpop.f32.mrb[15].mxu0  ;;  %v2313_v19 = vpop.f32.mrb[15].mxu1  ;;  %v2997_v2 = vadd.f32 %v2311_v58, %v3627_v52 }
 0x85a   :  { %v2982_v18 = vadd.f32 %v2242_v13, %v3620_v31  ;;  %v2998_v25 = vadd.f32 %v2313_v19, %v3624_v46 }
 0x85b   :  { %v2436_v51 = vmul.f32 -1.442695, %v2981_v9 }
 0x85c   :  { %v2437_v55 = vmul.f32 -1.442695, %v2982_v18  ;;  %v2438_v56 = vmul.f32 -1.442695, %v2998_v25 }
 0x85d   :  { %3155 = vpow2.f32 %v2436_v51 }
 0x85e   :  { %3157 = vpow2.f32 %v2437_v55 }
 0x85f   :  { %3159 = vpow2.f32 %v2438_v56 }
 0x860   :  { %3161 = vtanh.f32 %v2997_v2 }
 0x867   :  { %v3156_v3 = vpop.eup %3155 }
 0x868   :  { %v3158_v11 = vpop.eup %3157  ;;  %v2323_v21 = vadd.f32 1.0, %v3156_v3 }
 0x869   :  { %v2329_v22 = vadd.f32 1.0, %v3158_v11  ;;  %v3160_v28 = vpop.eup %3159 }
 0x86a   :  { %3163 = vrcp.f32 %v2323_v21  ;;  %v3162_v24 = vpop.eup %3161  ;;  %v2336_v57 = vadd.f32 1.0, %v3160_v28 }
 0x86b   :  { %3165 = vrcp.f32 %v2329_v22 }
 0x86c   :  { %3167 = vrcp.f32 %v2336_v57 }
 0x874   :  { %v3164_v31 = vpop.eup %3163 }
 0x875   :  { %v3166_v50 = vpop.eup %3165  ;;  %v2340_v37 = vmul.f32 %v3164_v31, %v3162_v24 }
 0x876   :  { %v2339_v26 = vmul.f32 %v3166_v50, %v2100_v7  ;;  %v3168_v46 = vpop.eup %3167 }
 0x878   :  { %v2341_v42 = vadd.f32 %v2340_v37, %v2339_v26 }
 0x87a   :  { %3169 = vtanh.f32 %v2341_v42  ;;  %2352 = vst [vmem:[#allocation16] sm:$0xff] %v2341_v42 }
 0x884   :  { %v3170_v52 = vpop.eup %3169 }
 0x885   :  { %v2343_v33 = vmul.f32 %v3170_v52, %v3168_v46 }
 0x887   :  { %2345 = vst [vmem:[#allocation13 + $0x38] sm:$0xff] %v2343_v33  ;;  %2351 = vst [vmem:[#allocation14] sm:$0xff] %v2343_v33 }
 0x888   :  { %3270 = shalt.err (!%p3267_p8)
}
 0x889   :  { %s3271_s0 = scalar_lea.hbm %s4003_s7, 128 }
 0x88a   :  { %p3272_p9 = scmp.ne.s32.totalorder %s4003_s7, %s3271_s0  ;;  %p3275_p10 = scmp.lt.u32.totalorder %s3271_s0, %s4003_s7 }
 0x88c   :  { %p3277_p11 = pnand %p3275_p10, %p3272_p9 }
 0x88e   :  { %3280 = shalt.err (!%p3277_p11)
}
 0x88f   :  { %2374 = dma.vmem_to_hbm [thread:$0]  %s2372_s13, 128, %s4003_s7, [#allocation15]  }
 0x890   :  { %s3281_s30 = scalar_lea.vmem %s3943_s17, 1024  ;;  %p3286_p13 = scmp.lt.s32.totalorder %s3943_s17, %s3943_s17 }
 0x891   :  { %p3282_p12 = scmp.ne.s32.totalorder %s3943_s17, %s3281_s30  ;;  %p3287_p0 = scmp.lt.s32.totalorder %s3281_s30, %s3281_s30 }
 0x893   :  { %p3288_p1 = por %p3287_p0, %p3286_p13 }
 0x895   :  { %p3289_p2 = pnand %p3288_p1, %p3282_p12 }
 0x897   :  { %3292 = shalt.err (!%p3289_p2)
}
 0x898   :  { %s3293_s12 = scalar_lea.hbm %s4002_s6, 1024 }
 0x899   :  { %p3294_p3 = scmp.ne.s32.totalorder %s4002_s6, %s3293_s12  ;;  %p3297_p4 = scmp.lt.u32.totalorder %s3293_s12, %s4002_s6 }
 0x89b   :  { %p3299_p5 = pnand %p3297_p4, %p3294_p3 }
 0x89d   :  { %3302 = shalt.err (!%p3299_p5)
}
 0x89e   :  { %2364 = dma.vmem_to_hbm [thread:$0]  %s3943_s17, 1024, %s4002_s6, [#allocation7], %s3339_s1, %s3339_s1, %s3340_s28  }
 0x89f   :  { %s3303_s11 = scalar_lea.vmem %s3945_s19, 128  ;;  %p3308_p7 = scmp.lt.s32.totalorder %s3945_s19, %s3945_s19 }
 0x8a0   :  { %p3304_p6 = scmp.ne.s32.totalorder %s3945_s19, %s3303_s11  ;;  %p3309_p8 = scmp.lt.s32.totalorder %s3303_s11, %s3303_s11 }
 0x8a2   :  { %p3310_p9 = por %p3309_p8, %p3308_p7 }
 0x8a4   :  { %p3311_p10 = pnand %p3310_p9, %p3304_p6 }
 0x8a6   :  { %3314 = shalt.err (!%p3311_p10)
}
 0x8a7   :  { %s3315_s14 = scalar_lea.hbm %s4004_s8, 128 }
 0x8a8   :  { %p3316_p11 = scmp.ne.s32.totalorder %s4004_s8, %s3315_s14  ;;  %p3319_p12 = scmp.lt.u32.totalorder %s3315_s14, %s4004_s8 }
 0x8aa   :  { %p3321_p13 = pnand %p3319_p12, %p3316_p11 }
 0x8ac   :  { %3324 = shalt.err (!%p3321_p13)
}
 0x8ad   :  { %2384 = dma.vmem_to_hbm [thread:$0]  %s3945_s19, 128, %s4004_s8, [#allocation15]  }
 0x8ae   :  { %3331 = dma.done.wait [#allocation7], 1024  }
 0x8af   :  { %3332 = vsyncadd [#allocation7], 4294966272 }
 0x8b0   :  { %3333 = dma.done.wait [#allocation15], 256  }
 0x8b1   :  { %3334 = vsyncadd [#allocation15], 4294967040 }
 0x8b2   :  { %2394 = vsyncpa [#allocation6], 1 }
 0x8b3   :  { %2395 = vsyncpa [#allocation9], 1 }
 0x8b4   :  { %2396 = vsyncpa [#allocation12], 1 }
 0x8b5   :  { %2397 = vsyncpa [#allocation7], 1 }
 0x8b6   :  { %2398 = vsyncpa [#allocation15], 1 }

</bundles_post_ra>
